<compile_context>
chip_gen: v7x
topology: tpu7x:2x2x1
jax: 0.10.0
libtpu: 0.0.40
codegen_flags: <defaults>
</compile_context>

<pallas_src>
import jax
import jax.numpy as jnp
from jax.experimental import pallas as pl
from jax.experimental.pallas import tpu as pltpu

HIDDEN = 768       # BERT-base hidden size (gate input / g2b output)
GLOVE = 300        # GloVe vector size (g2b input)
GLOVE_PAD = 384    # 300 padded up to a multiple of 128 (lane-dense DMA / clean MXU K)
LN_EPS = 1e-12     # BertEmbeddings LayerNorm eps


def _round_up(x, m):
    return ((x + m - 1) // m) * m


def gated_embed_kernel(emb_ref, gvec_ref, ln_g_ref, ln_b_ref,
                       w_gate_ref, b_gate_ref, w_g2b_ref, b_g2b_ref, o_ref):
    # emb_ref : [TN, 768]   sum of word+position+token_type embeddings (pre-LN), f32
    # gvec_ref: [TN, 384]   gathered GloVe vectors (zero padded), f32 or bf16
    # w_gate_ref: [1, 768]  gate weight (row layout), b_gate_ref: (1,) scalar in SMEM
    # w_g2b_ref : [384, 768], b_g2b_ref: [1, 768]
    e = emb_ref[...]

    # --- BertEmbeddings LayerNorm, one-pass statistics ---
    inv_h = jnp.float32(1.0 / HIDDEN)
    s1 = jnp.sum(e, axis=-1, keepdims=True)
    s2 = jnp.sum(e * e, axis=-1, keepdims=True)
    mean = s1 * inv_h
    var = jnp.maximum(s2 * inv_h - mean * mean, 0.0)   # guard tiny negative cancellation
    b = (e - mean) * jax.lax.rsqrt(var + LN_EPS)
    b = b * ln_g_ref[...] + ln_b_ref[...]

    # --- a = sigmoid(gate(b)) as VPU mul + cross-lane reduce (not a width-1 matmul) ---
    logits = jnp.sum(b * w_gate_ref[...], axis=-1, keepdims=True) + b_gate_ref[0]
    a = jax.nn.sigmoid(logits)                                   # [TN, 1]

    # --- g = g2b(wvec[wids]) on the MXU, f32 accumulation ---
    g = jnp.dot(gvec_ref[...], w_g2b_ref[...],
                preferred_element_type=jnp.float32) + b_g2b_ref[...]

    # --- gated blend (lean f32 epilogue) ---
    o_ref[...] = ((1.0 - a) * b + a * g).astype(o_ref.dtype)


def gated_embed(emb_sum, gvec, ln_g, ln_b, w_gate, b_gate, w_g2b, b_g2b,
                *, tn=1024, use_bf16=False):
    """emb_sum: [B,S,768] pre-LayerNorm embedding sum; gvec: [B,S,300] = wvec[wids]."""
    B, S, H = emb_sum.shape
    assert H == HIDDEN
    N = B * S

    # Row tile: multiple of 8, no larger than the (padded) problem.
    tn = min(tn, _round_up(N, 8))
    tn = _round_up(tn, 8)
    n_pad = _round_up(N, tn)
    grid = (pl.cdiv(n_pad, tn),)

    emb2 = emb_sum.reshape(N, H).astype(jnp.float32)
    gvec2 = gvec.reshape(N, gvec.shape[-1]).astype(jnp.float32)

    # Pad GloVe dim 300 -> 384 once (lane-dense DMA, clean MXU K).
    gk = gvec2.shape[-1]
    if gk < GLOVE_PAD:
        gvec2 = jnp.pad(gvec2, ((0, 0), (0, GLOVE_PAD - gk)))
    w_g2b_p = w_g2b.astype(jnp.float32)
    if w_g2b_p.shape[0] < GLOVE_PAD:
        w_g2b_p = jnp.pad(w_g2b_p, ((0, GLOVE_PAD - w_g2b_p.shape[0]), (0, 0)))

    # Pad rows up to a multiple of the tile (pad rows computed then discarded).
    if n_pad > N:
        emb2 = jnp.pad(emb2, ((0, n_pad - N), (0, 0)))
        gvec2 = jnp.pad(gvec2, ((0, n_pad - N), (0, 0)))

    if use_bf16:  # halve the gvec/w_g2b HBM read; MXU is bf16-native on v6e/v7x
        gvec2 = gvec2.astype(jnp.bfloat16)
        w_g2b_p = w_g2b_p.astype(jnp.bfloat16)

    ln_g2 = ln_g.reshape(1, H).astype(jnp.float32)
    ln_b2 = ln_b.reshape(1, H).astype(jnp.float32)
    w_gate_row = w_gate.reshape(1, H).astype(jnp.float32)      # (768,1) -> (1,768) row
    b_gate_s = b_gate.reshape(1).astype(jnp.float32)           # scalar, lives in SMEM
    b_g2b2 = b_g2b.reshape(1, H).astype(jnp.float32)

    row_spec = lambda width: pl.BlockSpec((tn, width), lambda i: (i, 0))
    const_spec = lambda shape: pl.BlockSpec(shape, lambda i: (0, 0))

    out = pl.pallas_call(
        gated_embed_kernel,
        out_shape=jax.ShapeDtypeStruct((n_pad, H), jnp.float32),
        grid=grid,
        in_specs=[
            row_spec(H),                                   # emb_sum tile
            row_spec(GLOVE_PAD),                           # wvec[wids] tile
            const_spec((1, H)),                            # LayerNorm gamma (resident)
            const_spec((1, H)),                            # LayerNorm beta  (resident)
            const_spec((1, H)),                            # gate weight row (resident)
            pl.BlockSpec(memory_space=pltpu.MemorySpace.SMEM),  # gate bias scalar
            const_spec((GLOVE_PAD, H)),                    # g2b weight (resident)
            const_spec((1, H)),                            # g2b bias (resident)
        ],
        out_specs=row_spec(H),
        compiler_params=pltpu.CompilerParams(
            dimension_semantics=("parallel",),             # shard rows across TCs on v7x
            vmem_limit_bytes=48 * 1024 * 1024,             # fits v7x's 64 MiB with headroom
        ),
    )(emb2, gvec2, ln_g2, ln_b2, w_gate_row, b_gate_s, w_g2b_p, b_g2b2)

    return out[:N].reshape(B, S, H)


def _reference(emb_sum, gvec, ln_g, ln_b, w_gate, b_gate, w_g2b, b_g2b):
    mean = jnp.mean(emb_sum, -1, keepdims=True)
    var = jnp.mean((emb_sum - mean) ** 2, -1, keepdims=True)
    b = (emb_sum - mean) * jax.lax.rsqrt(var + LN_EPS) * ln_g + ln_b
    a = jax.nn.sigmoid(b @ w_gate + b_gate)
    g = gvec @ w_g2b + b_g2b
    return (1.0 - a) * b + a * g


if __name__ == "__main__":
    VOCAB, TYPE_VOCAB, MAX_POS = 64, 2, 512   # small synthetic BERT embedding tables
    N_WORDS = 50                              # wvec rows before the appended zero row

    key = jax.random.PRNGKey(0)
    ks = jax.random.split(key, 12)

    # --- deterministic synthetic parameters (shapes from the module) ---
    word_emb = 0.02 * jax.random.normal(ks[0], (VOCAB, HIDDEN), jnp.float32)
    pos_emb = 0.02 * jax.random.normal(ks[1], (MAX_POS, HIDDEN), jnp.float32)
    type_emb = 0.02 * jax.random.normal(ks[2], (TYPE_VOCAB, HIDDEN), jnp.float32)
    ln_g = 1.0 + 0.1 * jax.random.normal(ks[3], (HIDDEN,), jnp.float32)
    ln_b = 0.1 * jax.random.normal(ks[4], (HIDDEN,), jnp.float32)

    w_g2b = 0.05 * jax.random.normal(ks[5], (GLOVE, HIDDEN), jnp.float32)   # nn.Linear(300, 768)
    b_g2b = 0.05 * jax.random.normal(ks[6], (HIDDEN,), jnp.float32)
    w_gate = 0.05 * jax.random.normal(ks[7], (HIDDEN, 1), jnp.float32)      # nn.Linear(768, 1)
    b_gate = 0.05 * jax.random.normal(ks[8], (1,), jnp.float32)

    # wvec = torch.cat([wvec, torch.zeros(1, 300)]) -> trailing zero row for padded word ids
    wvec = jnp.concatenate(
        [jax.random.normal(ks[9], (N_WORDS, GLOVE), jnp.float32),
         jnp.zeros((1, GLOVE), jnp.float32)], axis=0)

    def make_inputs(B, S, k_tok, k_wid):
        sents = jax.random.randint(k_tok, (B, S), 0, VOCAB)
        wids = jax.random.randint(k_wid, (B, S), 0, N_WORDS + 1)  # padded ids -> zero row
        positions = jnp.arange(S)
        emb_sum = (word_emb[sents] + pos_emb[positions][None, :, :]
                   + type_emb[0][None, None, :])
        gvec = wvec[wids]                                          # [B, S, 300]
        return emb_sum, gvec

    # --- test 1: toy shapes, single tile, f32 ---
    B, S = 2, 8
    emb_sum, gvec = make_inputs(B, S, ks[10], ks[11])
    x = gated_embed(emb_sum, gvec, ln_g, ln_b, w_gate, b_gate, w_g2b, b_g2b)
    jax.block_until_ready(x)
    x_ref = _reference(emb_sum, gvec, ln_g, ln_b, w_gate, b_gate, w_g2b, b_g2b)
    assert x.shape == (B, S, HIDDEN)
    assert jnp.allclose(x, x_ref, atol=1e-4, rtol=1e-4)

    # --- test 2: multi-tile path (grid > 1, resident weights), f32 ---
    B2, S2 = 4, 128
    k_tok2, k_wid2 = jax.random.split(jax.random.PRNGKey(1))
    emb_sum2, gvec2 = make_inputs(B2, S2, k_tok2, k_wid2)
    x2 = gated_embed(emb_sum2, gvec2, ln_g, ln_b, w_gate, b_gate, w_g2b, b_g2b, tn=128)
    jax.block_until_ready(x2)
    x2_ref = _reference(emb_sum2, gvec2, ln_g, ln_b, w_gate, b_gate, w_g2b, b_g2b)
    assert x2.shape == (B2, S2, HIDDEN)
    assert jnp.allclose(x2, x2_ref, atol=1e-4, rtol=1e-4)

    # --- test 3: bf16 g2b operands (perf option), loose tolerance vs f32 ref ---
    x3 = gated_embed(emb_sum2, gvec2, ln_g, ln_b, w_gate, b_gate, w_g2b, b_g2b,
                     tn=128, use_bf16=True)
    jax.block_until_ready(x3)
    assert jnp.allclose(x3, x2_ref, atol=5e-2, rtol=5e-2)

    print("KERNEL_OK")
</pallas_src>

<mosaic_0001>
module attributes {stable_mosaic.version = 11 : i64} {
  func.func @gated_embed_kernel(%arg0: i32, %arg1: memref<16x768xf32, #tpu.memory_space<vmem>>, %arg2: memref<16x384xf32, #tpu.memory_space<vmem>>, %arg3: memref<1x768xf32, #tpu.memory_space<vmem>>, %arg4: memref<1x768xf32, #tpu.memory_space<vmem>>, %arg5: memref<1x768xf32, #tpu.memory_space<vmem>>, %arg6: memref<1xf32, #tpu.memory_space<smem>>, %arg7: memref<384x768xf32, #tpu.memory_space<vmem>>, %arg8: memref<1x768xf32, #tpu.memory_space<vmem>>, %arg9: memref<16x768xf32, #tpu.memory_space<vmem>>) attributes {dimension_semantics = [#tpu.dimension_semantics<parallel>], iteration_bounds = array<i64: 1>, scalar_prefetch = 0 : i64, scratch_operands = 0 : i64, tpu.core_type = #tpu.core_type<tc>, window_params = [{transform_indices = @transform_0, window_bounds = array<i64: 16, 768>}, {transform_indices = @transform_1, window_bounds = array<i64: 16, 384>}, {pipeline_mode = #tpu.pipeline_mode<synchronous>, transform_indices = @transform_2, window_bounds = array<i64: 1, 768>}, {pipeline_mode = #tpu.pipeline_mode<synchronous>, transform_indices = @transform_3, window_bounds = array<i64: 1, 768>}, {pipeline_mode = #tpu.pipeline_mode<synchronous>, transform_indices = @transform_4, window_bounds = array<i64: 1, 768>}, {transform_indices = @transform_5, window_bounds = array<i64: 1>}, {pipeline_mode = #tpu.pipeline_mode<synchronous>, transform_indices = @transform_6, window_bounds = array<i64: 384, 768>}, {pipeline_mode = #tpu.pipeline_mode<synchronous>, transform_indices = @transform_7, window_bounds = array<i64: 1, 768>}, {transform_indices = @transform_8, window_bounds = array<i64: 16, 768>}]} {
    %c0 = arith.constant 0 : index
    %c0_0 = arith.constant 0 : index
    %0 = vector.load %arg1[%c0, %c0_0] : memref<16x768xf32, #tpu.memory_space<vmem>>, vector<16x768xf32>
    %cst = arith.constant dense<0.000000e+00> : vector<16xf32>
    %1 = vector.multi_reduction <add>, %0, %cst [1] : vector<16x768xf32> to vector<16xf32>
    %2 = vector.shape_cast %1 : vector<16xf32> to vector<16x1xf32>
    %3 = arith.mulf %0, %0 : vector<16x768xf32>
    %cst_1 = arith.constant dense<0.000000e+00> : vector<16xf32>
    %4 = vector.multi_reduction <add>, %3, %cst_1 [1] : vector<16x768xf32> to vector<16xf32>
    %5 = vector.shape_cast %4 : vector<16xf32> to vector<16x1xf32>
    %cst_2 = arith.constant 0.00130208337 : f32
    %6 = vector.broadcast %cst_2 : f32 to vector<16x1xf32>
    %7 = arith.mulf %2, %6 : vector<16x1xf32>
    %cst_3 = arith.constant 0.00130208337 : f32
    %8 = vector.broadcast %cst_3 : f32 to vector<16x1xf32>
    %9 = arith.mulf %5, %8 : vector<16x1xf32>
    %10 = arith.mulf %7, %7 : vector<16x1xf32>
    %11 = arith.subf %9, %10 : vector<16x1xf32>
    %cst_4 = arith.constant 0.000000e+00 : f32
    %12 = vector.broadcast %cst_4 : f32 to vector<16x1xf32>
    %13 = arith.maximumf %11, %12 : vector<16x1xf32>
    %14 = vector.broadcast %7 : vector<16x1xf32> to vector<16x768xf32>
    %15 = arith.subf %0, %14 : vector<16x768xf32>
    %cst_5 = arith.constant 9.99999996E-13 : f32
    %16 = vector.broadcast %cst_5 : f32 to vector<16x1xf32>
    %17 = arith.addf %13, %16 : vector<16x1xf32>
    %18 = math.rsqrt %17 : vector<16x1xf32>
    %19 = vector.broadcast %18 : vector<16x1xf32> to vector<16x768xf32>
    %20 = arith.mulf %15, %19 : vector<16x768xf32>
    %c0_6 = arith.constant 0 : index
    %c0_7 = arith.constant 0 : index
    %21 = vector.load %arg3[%c0_6, %c0_7] : memref<1x768xf32, #tpu.memory_space<vmem>>, vector<1x768xf32>
    %22 = vector.broadcast %21 : vector<1x768xf32> to vector<16x768xf32>
    %23 = arith.mulf %20, %22 : vector<16x768xf32>
    %c0_8 = arith.constant 0 : index
    %c0_9 = arith.constant 0 : index
    %24 = vector.load %arg4[%c0_8, %c0_9] : memref<1x768xf32, #tpu.memory_space<vmem>>, vector<1x768xf32>
    %25 = vector.broadcast %24 : vector<1x768xf32> to vector<16x768xf32>
    %26 = arith.addf %23, %25 : vector<16x768xf32>
    %c0_10 = arith.constant 0 : index
    %c0_11 = arith.constant 0 : index
    %27 = vector.load %arg5[%c0_10, %c0_11] : memref<1x768xf32, #tpu.memory_space<vmem>>, vector<1x768xf32>
    %28 = vector.broadcast %27 : vector<1x768xf32> to vector<16x768xf32>
    %29 = arith.mulf %26, %28 : vector<16x768xf32>
    %cst_12 = arith.constant dense<0.000000e+00> : vector<16xf32>
    %30 = vector.multi_reduction <add>, %29, %cst_12 [1] : vector<16x768xf32> to vector<16xf32>
    %31 = vector.shape_cast %30 : vector<16xf32> to vector<16x1xf32>
    %c0_13 = arith.constant 0 : index
    %32 = memref.load %arg6[%c0_13] : memref<1xf32, #tpu.memory_space<smem>>
    %33 = vector.broadcast %32 : f32 to vector<16x1xf32>
    %34 = arith.addf %31, %33 : vector<16x1xf32>
    %35 = arith.negf %34 : vector<16x1xf32>
    %36 = math.exp %35 : vector<16x1xf32>
    %cst_14 = arith.constant 1.000000e+00 : f32
    %37 = vector.broadcast %cst_14 : f32 to vector<16x1xf32>
    %38 = arith.addf %37, %36 : vector<16x1xf32>
    %39 = arith.divf %37, %38 : vector<16x1xf32>
    %c0_15 = arith.constant 0 : index
    %c0_16 = arith.constant 0 : index
    %40 = vector.load %arg2[%c0_15, %c0_16] : memref<16x384xf32, #tpu.memory_space<vmem>>, vector<16x384xf32>
    %c0_17 = arith.constant 0 : index
    %c0_18 = arith.constant 0 : index
    %41 = vector.load %arg7[%c0_17, %c0_18] : memref<384x768xf32, #tpu.memory_space<vmem>>, vector<384x768xf32>
    %cst_19 = arith.constant dense<0.000000e+00> : vector<16x768xf32>
    %42 = tpu.matmul %40, %41, %cst_19 {dimension_numbers = #tpu.dot_dimension_numbers<[1], [0], [0], [1], [0, 0, 1, 1], [], []>} : vector<16x384xf32>, vector<384x768xf32>, vector<16x768xf32> -> vector<16x768xf32>
    %c0_20 = arith.constant 0 : index
    %c0_21 = arith.constant 0 : index
    %43 = vector.load %arg8[%c0_20, %c0_21] : memref<1x768xf32, #tpu.memory_space<vmem>>, vector<1x768xf32>
    %44 = vector.broadcast %43 : vector<1x768xf32> to vector<16x768xf32>
    %45 = arith.addf %42, %44 : vector<16x768xf32>
    %cst_22 = arith.constant 1.000000e+00 : f32
    %46 = vector.broadcast %cst_22 : f32 to vector<16x1xf32>
    %47 = arith.subf %46, %39 : vector<16x1xf32>
    %48 = vector.broadcast %47 : vector<16x1xf32> to vector<16x768xf32>
    %49 = arith.mulf %48, %26 : vector<16x768xf32>
    %50 = vector.broadcast %39 : vector<16x1xf32> to vector<16x768xf32>
    %51 = arith.mulf %50, %45 : vector<16x768xf32>
    %52 = arith.addf %49, %51 : vector<16x768xf32>
    %c0_23 = arith.constant 0 : index
    %c0_24 = arith.constant 0 : index
    %53 = vector.load %arg9[%c0_23, %c0_24] : memref<16x768xf32, #tpu.memory_space<vmem>>, vector<16x768xf32>
    tpu.vector_store %arg9[%c0_23, %c0_24], %52 {strides = array<i32>} : memref<16x768xf32, #tpu.memory_space<vmem>>, vector<16x768xf32>,
    return
  }
  func.func @transform_0(%arg0: i32) -> (i32, i32) {
    %c0_i32 = arith.constant 0 : i32
    %c0_i32_0 = arith.constant 0 : i32
    return %arg0, %c0_i32 : i32, i32
  }
  func.func @transform_1(%arg0: i32) -> (i32, i32) {
    %c0_i32 = arith.constant 0 : i32
    %c0_i32_0 = arith.constant 0 : i32
    return %arg0, %c0_i32 : i32, i32
  }
  func.func @transform_2(%arg0: i32) -> (i32, i32) {
    %c0_i32 = arith.constant 0 : i32
    %c0_i32_0 = arith.constant 0 : i32
    %c0_i32_1 = arith.constant 0 : i32
    return %c0_i32, %c0_i32_0 : i32, i32
  }
  func.func @transform_3(%arg0: i32) -> (i32, i32) {
    %c0_i32 = arith.constant 0 : i32
    %c0_i32_0 = arith.constant 0 : i32
    %c0_i32_1 = arith.constant 0 : i32
    return %c0_i32, %c0_i32_0 : i32, i32
  }
  func.func @transform_4(%arg0: i32) -> (i32, i32) {
    %c0_i32 = arith.constant 0 : i32
    %c0_i32_0 = arith.constant 0 : i32
    %c0_i32_1 = arith.constant 0 : i32
    return %c0_i32, %c0_i32_0 : i32, i32
  }
  func.func @transform_5(%arg0: i32) -> i32 {
    %c0_i32 = arith.constant 0 : i32
    %c0_i32_0 = arith.constant 0 : i32
    return %c0_i32 : i32
  }
  func.func @transform_6(%arg0: i32) -> (i32, i32) {
    %c0_i32 = arith.constant 0 : i32
    %c0_i32_0 = arith.constant 0 : i32
    %c0_i32_1 = arith.constant 0 : i32
    return %c0_i32, %c0_i32_0 : i32, i32
  }
  func.func @transform_7(%arg0: i32) -> (i32, i32) {
    %c0_i32 = arith.constant 0 : i32
    %c0_i32_0 = arith.constant 0 : i32
    %c0_i32_1 = arith.constant 0 : i32
    return %c0_i32, %c0_i32_0 : i32, i32
  }
  func.func @transform_8(%arg0: i32) -> (i32, i32) {
    %c0_i32 = arith.constant 0 : i32
    %c0_i32_0 = arith.constant 0 : i32
    return %arg0, %c0_i32 : i32, i32
  }
}

</mosaic_0001>

<bundles_post_ra>
// kernel: tpu_custom_call.1
= control target key start
LH: loop header
LB: loop body
LE: loop exit
PB: predicated region body
PF: predicated region fallthrough
CT: control target
= control target key end

     0   :  { %14 = vsyncpa [#allocation4], 0  ;;  %s2126_s0 = inlined_call_operand.hbm [shape: f32[16,768], index: 0, kind: input, shape index: {}]   ;;  %s2127_s1 = inlined_call_operand.hbm [shape: f32[16,384], index: 1, kind: input, shape index: {}]   ;;  %s2128_s2 = inlined_call_operand.hbm [shape: f32[1,768], index: 2, kind: input, shape index: {}]   ;;  %s2129_s3 = inlined_call_operand.hbm [shape: f32[1,768], index: 3, kind: input, shape index: {}]   ;;  %s2130_s4 = inlined_call_operand.hbm [shape: f32[1,768], index: 4, kind: input, shape index: {}]   ;;  %s2131_s5 = inlined_call_operand.<no memory space> [shape: f32[1], index: 5, kind: input, shape index: {}]   ;;  %s2132_s6 = inlined_call_operand.hbm [shape: f32[384,768], index: 6, kind: input, shape index: {}]   ;;  %s2133_s7 = inlined_call_operand.hbm [shape: f32[1,768], index: 7, kind: input, shape index: {}]   ;;  %s2134_s8 = inlined_call_operand.hbm [shape: f32[16,768], index: 8, kind: output, shape index: {}]  }
   0x1   :  { %15 = vsyncpa [#allocation7], 0 }
   0x2   :  { %16 = vsyncpa [#allocation10], 0 }
   0x3   :  { %17 = vsyncpa [#allocation13], 0 }
   0x4   :  { %18 = vsyncpa [#allocation5], 0  ;;  %s1765_s27 = smov [#allocation6]   ;;  %s1579_s9 = scalar_lea.hbm %s2127_s1, 768 }
   0x5   :  { %s36_s28 = sshll.u32 %s1765_s27, 4  ;;  %p1580_p0 = scmp.ne.s32.totalorder %s2127_s1, %s1579_s9  ;;  %s37_s28 = int_to_ptr.vmem [resolvable:$true] %s36_s28 }
   0x6   :  { %p1583_p1 = scmp.lt.u32.totalorder %s1579_s9, %s2127_s1 }
   0x8   :  { %p1585_p2 = pnand %p1583_p1, %p1580_p0 }
   0xa   :  { %1588 = shalt.err (!%p1585_p2)
}
   0xb   :  { %s1589_s14 = scalar_lea.vmem %s37_s28, 768  ;;  %p1594_p4 = scmp.lt.s32.totalorder %s37_s28, %s37_s28 }
   0xc   :  { %p1590_p3 = scmp.ne.s32.totalorder %s37_s28, %s1589_s14  ;;  %p1595_p5 = scmp.lt.s32.totalorder %s1589_s14, %s1589_s14 }
   0xe   :  { %p1596_p6 = por %p1595_p5, %p1594_p4 }
  0x10   :  { %p1597_p7 = pnand %p1596_p6, %p1590_p3 }
  0x12   :  { %1600 = shalt.err (!%p1597_p7)
}
  0x13   :  { %s1766_s15 = smov 384   ;;  %s1767_s16 = smov 24  }
  0x14   :  { %42 = dma.hbm_to_vmem [thread:$0]  %s2127_s1, 768, %s37_s28, [#allocation7], %s1766_s15, %s1766_s15, %s1767_s16  }
  0x15   :  { %s1768_s19 = smov [#allocation9]   ;;  %s1601_s23 = scalar_lea.hbm %s2129_s3, 96 }
  0x16   :  { %s59_s20 = sshll.u32 %s1768_s19, 4  ;;  %p1602_p8 = scmp.ne.s32.totalorder %s2129_s3, %s1601_s23  ;;  %s60_s20 = int_to_ptr.vmem [resolvable:$true] %s59_s20 }
  0x17   :  { %p1605_p9 = scmp.lt.u32.totalorder %s1601_s23, %s2129_s3 }
  0x19   :  { %p1607_p10 = pnand %p1605_p9, %p1602_p8 }
  0x1b   :  { %1610 = shalt.err (!%p1607_p10)
}
  0x1c   :  { %s1611_s29 = scalar_lea.vmem %s60_s20, 96  ;;  %p1616_p12 = scmp.lt.s32.totalorder %s60_s20, %s60_s20 }
  0x1d   :  { %p1612_p11 = scmp.ne.s32.totalorder %s60_s20, %s1611_s29  ;;  %p1617_p13 = scmp.lt.s32.totalorder %s1611_s29, %s1611_s29 }
  0x1f   :  { %p1618_p0 = por %p1617_p13, %p1616_p12 }
  0x21   :  { %p1619_p1 = pnand %p1618_p0, %p1612_p11 }
  0x23   :  { %1622 = shalt.err (!%p1619_p1)
}
  0x24   :  { %62 = dma.hbm_to_vmem [thread:$0]  %s2129_s3, 96, %s60_s20, [#allocation10]  }
  0x25   :  { %s1769_s30 = smov [#allocation12]   ;;  %s1770_s10 = smov [#allocation3]  }
  0x26   :  { %s80_s9 = sshll.u32 %s1769_s30, 4  ;;  %s24_s11 = sshll.u32 %s1770_s10, 4  ;;  %s81_s9 = int_to_ptr.vmem [resolvable:$true] %s80_s9  ;;  %s1847_s11 = int_to_ptr.vmem [resolvable:$true] %s24_s11 }
  0x27   :  { %s1623_s14 = scalar_lea.hbm %s2132_s6, 36864 }
  0x28   :  { %p1624_p2 = scmp.ne.s32.totalorder %s2132_s6, %s1623_s14  ;;  %p1627_p3 = scmp.lt.u32.totalorder %s1623_s14, %s2132_s6 }
  0x2a   :  { %p1629_p4 = pnand %p1627_p3, %p1624_p2 }
  0x2c   :  { %1632 = shalt.err (!%p1629_p4)
}
  0x2d   :  { %s1633_s3 = scalar_lea.vmem %s81_s9, 36864  ;;  %p1638_p6 = scmp.lt.s32.totalorder %s81_s9, %s81_s9 }
  0x2e   :  { %p1634_p5 = scmp.ne.s32.totalorder %s81_s9, %s1633_s3  ;;  %p1639_p7 = scmp.lt.s32.totalorder %s1633_s3, %s1633_s3 }
  0x30   :  { %p1640_p8 = por %p1639_p7, %p1638_p6 }
  0x32   :  { %p1641_p9 = pnand %p1640_p8, %p1634_p5 }
  0x34   :  { %1644 = shalt.err (!%p1641_p9)
}
  0x35   :  { %s1771_s19 = smov 768   ;;  %s1772_s20 = smov 48  }
  0x36   :  { %86 = dma.hbm_to_vmem [thread:$0]  %s2132_s6, 36864, %s81_s9, [#allocation13], %s1771_s19, %s1771_s19, %s1772_s20  }
  0x37   :  { %s1645_s25 = scalar_lea.hbm %s2126_s0, 1536 }
  0x38   :  { %p1646_p10 = scmp.ne.s32.totalorder %s2126_s0, %s1645_s25  ;;  %p1649_p11 = scmp.lt.u32.totalorder %s1645_s25, %s2126_s0 }
  0x3a   :  { %p1651_p12 = pnand %p1649_p11, %p1646_p10 }
  0x3c   :  { %1654 = shalt.err (!%p1651_p12)
}
  0x3d   :  { %s1655_s28 = scalar_lea.vmem %s1847_s11, 1536  ;;  %p1660_p0 = scmp.lt.s32.totalorder %s1847_s11, %s1847_s11 }
  0x3e   :  { %p1656_p13 = scmp.ne.s32.totalorder %s1847_s11, %s1655_s28  ;;  %p1661_p1 = scmp.lt.s32.totalorder %s1655_s28, %s1655_s28 }
  0x40   :  { %p1662_p2 = por %p1661_p1, %p1660_p0 }
  0x42   :  { %p1663_p3 = pnand %p1662_p2, %p1656_p13 }
  0x44   :  { %1666 = shalt.err (!%p1663_p3)
}
  0x45   :  { %30 = dma.hbm_to_vmem [thread:$0]  %s2126_s0, 1536, %s1847_s11, [#allocation4], %s1771_s19, %s1771_s19, %s1772_s20  }
  0x46   :  { %s1773_s9 = smov [#allocation8]   ;;  %s1774_s12 = smov [#allocation11]  }
  0x47   :  { %s49_s10 = sshll.u32 %s1773_s9, 4  ;;  %s69_s13 = sshll.u32 %s1774_s12, 4  ;;  %s50_s10 = int_to_ptr.vmem [resolvable:$true] %s49_s10  ;;  %s70_s13 = int_to_ptr.vmem [resolvable:$true] %s69_s13 }
  0x48   :  { %s1667_s16 = scalar_lea.hbm %s2128_s2, 96 }
  0x49   :  { %p1668_p4 = scmp.ne.s32.totalorder %s2128_s2, %s1667_s16  ;;  %p1671_p5 = scmp.lt.u32.totalorder %s1667_s16, %s2128_s2 }
  0x4b   :  { %p1673_p6 = pnand %p1671_p5, %p1668_p4 }
  0x4d   :  { %1676 = shalt.err (!%p1673_p6)
}
  0x4e   :  { %s1677_s0 = scalar_lea.vmem %s50_s10, 96  ;;  %p1682_p8 = scmp.lt.s32.totalorder %s50_s10, %s50_s10 }
  0x4f   :  { %p1678_p7 = scmp.ne.s32.totalorder %s50_s10, %s1677_s0  ;;  %p1683_p9 = scmp.lt.s32.totalorder %s1677_s0, %s1677_s0 }
  0x51   :  { %p1684_p10 = por %p1683_p9, %p1682_p8 }
  0x53   :  { %p1685_p11 = pnand %p1684_p10, %p1678_p7 }
  0x55   :  { %1688 = shalt.err (!%p1685_p11)
}
  0x56   :  { %52 = dma.hbm_to_vmem [thread:$0]  %s2128_s2, 96, %s50_s10, [#allocation7]  }
  0x57   :  { %s1689_s25 = scalar_lea.hbm %s2130_s4, 96 }
  0x58   :  { %p1690_p12 = scmp.ne.s32.totalorder %s2130_s4, %s1689_s25  ;;  %p1693_p13 = scmp.lt.u32.totalorder %s1689_s25, %s2130_s4 }
  0x5a   :  { %p1695_p0 = pnand %p1693_p13, %p1690_p12 }
  0x5c   :  { %1698 = shalt.err (!%p1695_p0)
}
  0x5d   :  { %s1699_s28 = scalar_lea.vmem %s70_s13, 96  ;;  %p1704_p2 = scmp.lt.s32.totalorder %s70_s13, %s70_s13 }
  0x5e   :  { %p1700_p1 = scmp.ne.s32.totalorder %s70_s13, %s1699_s28  ;;  %p1705_p3 = scmp.lt.s32.totalorder %s1699_s28, %s1699_s28 }
  0x60   :  { %p1706_p4 = por %p1705_p3, %p1704_p2 }
  0x62   :  { %p1707_p5 = pnand %p1706_p4, %p1700_p1 }
  0x64   :  { %1710 = shalt.err (!%p1707_p5)
}
  0x65   :  { %72 = dma.hbm_to_vmem [thread:$0]  %s2130_s4, 96, %s70_s13, [#allocation10]  }
  0x66   :  { %s1775_s30 = smov [#allocation14]   ;;  %s1711_s14 = scalar_lea.hbm %s2133_s7, 96 }
  0x67   :  { %s93_s9 = sshll.u32 %s1775_s30, 4  ;;  %p1712_p6 = scmp.ne.s32.totalorder %s2133_s7, %s1711_s14  ;;  %s94_s9 = int_to_ptr.vmem [resolvable:$true] %s93_s9 }
  0x68   :  { %p1715_p7 = scmp.lt.u32.totalorder %s1711_s14, %s2133_s7 }
  0x6a   :  { %p1717_p8 = pnand %p1715_p7, %p1712_p6 }
  0x6c   :  { %1720 = shalt.err (!%p1717_p8)
}
  0x6d   :  { %s1721_s3 = scalar_lea.vmem %s94_s9, 96  ;;  %p1726_p10 = scmp.lt.s32.totalorder %s94_s9, %s94_s9 }
  0x6e   :  { %p1722_p9 = scmp.ne.s32.totalorder %s94_s9, %s1721_s3  ;;  %p1727_p11 = scmp.lt.s32.totalorder %s1721_s3, %s1721_s3 }
  0x70   :  { %p1728_p12 = por %p1727_p11, %p1726_p10 }
  0x72   :  { %p1729_p13 = pnand %p1728_p12, %p1722_p9 }
  0x74   :  { %1732 = shalt.err (!%p1729_p13)
}
  0x75   :  { %96 = dma.hbm_to_vmem [thread:$0]  %s2133_s7, 96, %s94_s9, [#allocation13]  }
  0x76   :  { %1755 = dma.done.wait [#allocation4], 1536  }
  0x77   :  { %1756 = vsyncadd [#allocation4], 4294965760 }
  0x78   :  { %1757 = dma.done.wait [#allocation7], 864  }
  0x79   :  { %1758 = vsyncadd [#allocation7], 4294966432 }
  0x7a   :  { %1759 = dma.done.wait [#allocation10], 192  }
  0x7b   :  { %1760 = vsyncadd [#allocation10], 4294967104 }
  0x7c   :  { %1761 = dma.done.wait [#allocation13], 36960  }
  0x7d   :  { %1762 = vsyncadd [#allocation13], 4294930336  ;;  %v1776_v0 = vmov 0.0   ;;  %v377_v1 = vld [vmem:[#allocation12 + $0x8] sm:$0xff]  ;;  %v383_v2 = vld [vmem:[#allocation12 + $0x38] sm:$0xff] }
  0x7e   :  { %837 = vmatprep.mubr.f32.mxu0 %v1776_v0  ;;  %v569_v3 = vld [vmem:[#allocation12 + $0x608] sm:$0xff]  ;;  %v1230_v4 = vpack.c.bf16 %v383_v2, %v377_v1  ;;  %v575_v5 = vld [vmem:[#allocation12 + $0x638] sm:$0xff]  ;;  %v376_v6 = vld [vmem:[#allocation12] sm:$0xff] }
  0x7f   :  { %v382_v7 = vld [vmem:[#allocation12 + $0x30] sm:$0xff]  ;;  %v1294_v8 = vpack.c.bf16 %v575_v5, %v569_v3  ;;  %v568_v10 = vld [vmem:[#allocation12 + $0x600] sm:$0xff]  ;;  %v389_v12 = vld [vmem:[#allocation12 + $0x68] sm:$0xff] }
  0x80   :  { %v1232_v9 = vpack.c.bf16 %v382_v7, %v376_v6  ;;  %v574_v11 = vld [vmem:[#allocation12 + $0x630] sm:$0xff]  ;;  %1231 = vmatprep.subr.bf16.mxu1 %v1230_v4  ;;  %v395_v14 = vld [vmem:[#allocation12 + $0x98] sm:$0xff]  ;;  %v581_v15 = vld [vmem:[#allocation12 + $0x668] sm:$0xff] }
  0x81   :  { %v1296_v13 = vpack.c.bf16 %v574_v11, %v568_v10  ;;  %v587_v16 = vld [vmem:[#allocation12 + $0x698] sm:$0xff]  ;;  %1295 = vmatprep.subr.bf16.mxu0 %v1294_v8  ;;  %v1234_v17 = vpack.c.bf16 %v395_v14, %v389_v12  ;;  %v388_v19 = vld [vmem:[#allocation12 + $0x60] sm:$0xff]  ;;  %v394_v20 = vld [vmem:[#allocation12 + $0x90] sm:$0xff] }
  0x82   :  { %1233 = vmatpush1.bf16.msra.mxu1 %v1232_v9  ;;  %v1298_v18 = vpack.c.bf16 %v587_v16, %v581_v15  ;;  %v580_v21 = vld [vmem:[#allocation12 + $0x660] sm:$0xff]  ;;  %v1236_v22 = vpack.c.bf16 %v394_v20, %v388_v19  ;;  %v586_v23 = vld [vmem:[#allocation12 + $0x690] sm:$0xff]  ;;  %v401_v24 = vld [vmem:[#allocation12 + $0xc8] sm:$0xff] }
  0x83   :  { %1297 = vmatpush1.bf16.msra.mxu0 %v1296_v13  ;;  %v407_v25 = vld [vmem:[#allocation12 + $0xf8] sm:$0xff]  ;;  %1235 = vmatprep.subr.bf16.mxu1 %v1234_v17  ;;  %v1300_v26 = vpack.c.bf16 %v586_v23, %v580_v21  ;;  %v593_v28 = vld [vmem:[#allocation12 + $0x6c8] sm:$0xff]  ;;  %v400_v39 = vld [vmem:[#allocation12 + $0xc0] sm:$0xff] }
  0x84   :  { %1299 = vmatprep.subr.bf16.mxu0 %v1298_v18  ;;  %v1238_v27 = vpack.c.bf16 %v407_v25, %v401_v24  ;;  %v599_v29 = vld [vmem:[#allocation12 + $0x6f8] sm:$0xff]  ;;  %v119_v32 = vld [vmem:[#allocation3 + $0x8] sm:$0xff]  ;;  %v120_v33 = vld [vmem:[#allocation3 + $0x10] sm:$0xff] }
  0x85   :  { %v118_v30 = vld [vmem:[#allocation3] sm:$0xff]  ;;  %v1302_v31 = vpack.c.bf16 %v599_v29, %v593_v28  ;;  %v121_v34 = vld [vmem:[#allocation3 + $0x18] sm:$0xff]  ;;  %v123_v37 = vld [vmem:[#allocation3 + $0x28] sm:$0xff]  ;;  %v145_v40 = vmul.f32 %v119_v32, %v119_v32  ;;  %v146_v41 = vmul.f32 %v120_v33, %v120_v33 }
  0x86   :  { %v144_v35 = vmul.f32 %v118_v30, %v118_v30  ;;  %1237 = vmatpush1.bf16.msra.mxu1 %v1236_v22  ;;  %v122_v36 = vld [vmem:[#allocation3 + $0x20] sm:$0xff]  ;;  %v130_v38 = vadd.f32 %v119_v32, %v118_v30  ;;  %v406_v42 = vld [vmem:[#allocation12 + $0xf0] sm:$0xff]  ;;  %v147_v45 = vmul.f32 %v121_v34, %v121_v34  ;;  %v413_v50 = vld [vmem:[#allocation12 + $0x128] sm:$0xff]  ;;  %v149_v54 = vmul.f32 %v123_v37, %v123_v37 }
  0x87   :  { %1301 = vmatpush1.bf16.msra.mxu0 %v1300_v26  ;;  %1239 = vmatprep.subr.bf16.mxu1 %v1238_v27  ;;  %v592_v43 = vld [vmem:[#allocation12 + $0x6c0] sm:$0xff]  ;;  %v598_v44 = vld [vmem:[#allocation12 + $0x6f0] sm:$0xff]  ;;  %v1240_v47 = vpack.c.bf16 %v406_v42, %v400_v39  ;;  %v419_v51 = vld [vmem:[#allocation12 + $0x158] sm:$0xff]  ;;  %v148_v53 = vmul.f32 %v122_v36, %v122_v36 }
  0x88   :  { %1303 = vmatprep.subr.bf16.mxu0 %v1302_v31  ;;  %v131_v46 = vadd.f32 %v130_v38, %v120_v33  ;;  %v1304_v48 = vpack.c.bf16 %v598_v44, %v592_v43  ;;  %v156_v49 = vadd.f32 %v145_v40, %v144_v35  ;;  %v605_v52 = vld [vmem:[#allocation12 + $0x728] sm:$0xff]  ;;  %v1242_v55 = vpack.c.bf16 %v419_v51, %v413_v50  ;;  %v611_v56 = vld [vmem:[#allocation12 + $0x758] sm:$0xff]  ;;  %v412_v3 = vld [vmem:[#allocation12 + $0x120] sm:$0xff] }
  0x89   :  { %v124_v57 = vld [vmem:[#allocation3 + $0x30] sm:$0xff]  ;;  %v125_v58 = vld [vmem:[#allocation3 + $0x38] sm:$0xff]  ;;  %v1306_v61 = vpack.c.bf16 %v611_v56, %v605_v52  ;;  %v126_v62 = vld [vmem:[#allocation3 + $0x40] sm:$0xff] }
  0x8a   :  { %v132_v59 = vadd.f32 %v131_v46, %v121_v34  ;;  %1241 = vmatpush1.bf16.msra.mxu1 %v1240_v47  ;;  %v157_v60 = vadd.f32 %v156_v49, %v146_v41  ;;  %v127_v63 = vld [vmem:[#allocation3 + $0x48] sm:$0xff]  ;;  %v137_v1 = vadd.f32 %v125_v58, %v124_v57  ;;  %v128_v2 = vld [vmem:[#allocation3 + $0x50] sm:$0xff]  ;;  %v150_v5 = vmul.f32 %v124_v57, %v124_v57  ;;  %v129_v10 = vld [vmem:[#allocation3 + $0x58] sm:$0xff] }
  0x8b   :  { %1305 = vmatpush1.bf16.msra.mxu0 %v1304_v48  ;;  %1243 = vmatprep.subr.bf16.mxu1 %v1242_v55  ;;  %v418_v4 = vld [vmem:[#allocation12 + $0x150] sm:$0xff]  ;;  %v151_v6 = vmul.f32 %v125_v58, %v125_v58  ;;  %v152_v7 = vmul.f32 %v126_v62, %v126_v62  ;;  %v604_v13 = vld [vmem:[#allocation12 + $0x720] sm:$0xff]  ;;  %v425_v15 = vld [vmem:[#allocation12 + $0x188] sm:$0xff]  ;;  %v153_v17 = vmul.f32 %v127_v63, %v127_v63 }
  0x8c   :  { %v133_v8 = vadd.f32 %v132_v59, %v122_v36  ;;  %v158_v9 = vadd.f32 %v157_v60, %v147_v45  ;;  %1307 = vmatprep.subr.bf16.mxu0 %v1306_v61  ;;  %v138_v11 = vadd.f32 %v137_v1, %v126_v62  ;;  %v1244_v12 = vpack.c.bf16 %v418_v4, %v412_v3  ;;  %v610_v14 = vld [vmem:[#allocation12 + $0x750] sm:$0xff]  ;;  %v431_v18 = vld [vmem:[#allocation12 + $0x1b8] sm:$0xff]  ;;  %v617_v19 = vld [vmem:[#allocation12 + $0x788] sm:$0xff] }
  0x8d   :  { %v1308_v16 = vpack.c.bf16 %v610_v14, %v604_v13  ;;  %v623_v20 = vld [vmem:[#allocation12 + $0x7b8] sm:$0xff]  ;;  %v163_v24 = vadd.f32 %v151_v6, %v150_v5  ;;  %v424_v25 = vld [vmem:[#allocation12 + $0x180] sm:$0xff]  ;;  %v430_v26 = vld [vmem:[#allocation12 + $0x1b0] sm:$0xff]  ;;  %v154_v28 = vmul.f32 %v128_v2, %v128_v2  ;;  %v1246_v29 = vpack.c.bf16 %v431_v18, %v425_v15 }
  0x8e   :  { %v134_v21 = vadd.f32 %v133_v8, %v123_v37  ;;  %v159_v22 = vadd.f32 %v158_v9, %v148_v53  ;;  %v139_v23 = vadd.f32 %v138_v11, %v127_v63  ;;  %1245 = vmatpush1.bf16.msra.mxu1 %v1244_v12  ;;  %v616_v27 = vld [vmem:[#allocation12 + $0x780] sm:$0xff]  ;;  %v1310_v30 = vpack.c.bf16 %v623_v20, %v617_v19  ;;  %v622_v32 = vld [vmem:[#allocation12 + $0x7b0] sm:$0xff]  ;;  %v437_v33 = vld [vmem:[#allocation12 + $0x1e8] sm:$0xff] }
  0x8f   :  { %1309 = vmatpush1.bf16.msra.mxu0 %v1308_v16  ;;  %v1248_v31 = vpack.c.bf16 %v430_v26, %v424_v25  ;;  %v443_v34 = vld [vmem:[#allocation12 + $0x218] sm:$0xff]  ;;  %v164_v38 = vadd.f32 %v163_v24, %v152_v7  ;;  %v1312_v37 = vpack.c.bf16 %v622_v32, %v616_v27  ;;  %v629_v39 = vld [vmem:[#allocation12 + $0x7e8] sm:$0xff]  ;;  %v436_v41 = vld [vmem:[#allocation12 + $0x1e0] sm:$0xff]  ;;  %v155_v42 = vmul.f32 %v129_v10, %v129_v10 }
  0x90   :  { %135 = vadd.xlane.f32.xlu0 %v134_v21  ;;  %v160_v35 = vadd.f32 %v159_v22, %v149_v54  ;;  %v140_v36 = vadd.f32 %v139_v23, %v128_v2  ;;  %v635_v40 = vld [vmem:[#allocation12 + $0x818] sm:$0xff]  ;;  %1247 = vmatprep.subr.bf16.mxu1 %v1246_v29  ;;  %v1250_v43 = vpack.c.bf16 %v443_v34, %v437_v33  ;;  %v442_v45 = vld [vmem:[#allocation12 + $0x210] sm:$0xff]  ;;  %v628_v46 = vld [vmem:[#allocation12 + $0x7e0] sm:$0xff] }
  0x91   :  { %1311 = vmatprep.subr.bf16.mxu0 %v1310_v30  ;;  %v1314_v44 = vpack.c.bf16 %v635_v40, %v629_v39  ;;  %v634_v47 = vld [vmem:[#allocation12 + $0x810] sm:$0xff]  ;;  %v165_v49 = vadd.f32 %v164_v38, %v153_v17  ;;  %v1252_v50 = vpack.c.bf16 %v442_v45, %v436_v41  ;;  %v449_v51 = vld [vmem:[#allocation12 + $0x248] sm:$0xff]  ;;  %v455_v52 = vld [vmem:[#allocation12 + $0x278] sm:$0xff] }
  0x92   :  { %161 = vadd.xlane.f32.xlu1 %v160_v35  ;;  %v141_v48 = vadd.f32 %v140_v36, %v129_v10  ;;  %1249 = vmatpush1.bf16.msra.mxu1 %v1248_v31  ;;  %v641_v53 = vld [vmem:[#allocation12 + $0x848] sm:$0xff]  ;;  %v1316_v54 = vpack.c.bf16 %v634_v47, %v628_v46  ;;  %v1254_v55 = vpack.c.bf16 %v455_v52, %v449_v51  ;;  %v647_v56 = vld [vmem:[#allocation12 + $0x878] sm:$0xff]  ;;  %v448_v57 = vld [vmem:[#allocation12 + $0x240] sm:$0xff] }
  0x93   :  { %1313 = vmatpush1.bf16.msra.mxu0 %v1312_v37  ;;  %1251 = vmatprep.subr.bf16.mxu1 %v1250_v43  ;;  %v454_v58 = vld [vmem:[#allocation12 + $0x270] sm:$0xff]  ;;  %v166_v59 = vadd.f32 %v165_v49, %v154_v28  ;;  %v1318_v60 = vpack.c.bf16 %v647_v56, %v641_v53  ;;  %v640_v61 = vld [vmem:[#allocation12 + $0x840] sm:$0xff]  ;;  %v461_v63 = vld [vmem:[#allocation12 + $0x2a8] sm:$0xff] }
  0x94   :  { %142 = vadd.xlane.f32.xlu0 %v141_v48  ;;  %1315 = vmatprep.subr.bf16.mxu0 %v1314_v44  ;;  %v646_v62 = vld [vmem:[#allocation12 + $0x870] sm:$0xff]  ;;  %v467_v1 = vld [vmem:[#allocation12 + $0x2d8] sm:$0xff]  ;;  %v653_v2 = vld [vmem:[#allocation12 + $0x8a8] sm:$0xff]  ;;  %v1256_v5 = vpack.c.bf16 %v454_v58, %v448_v57 }
  0x95   :  { %v659_v3 = vld [vmem:[#allocation12 + $0x8d8] sm:$0xff]  ;;  %v167_v4 = vadd.f32 %v166_v59, %v155_v42  ;;  %v1320_v6 = vpack.c.bf16 %v646_v62, %v640_v61  ;;  %v1258_v7 = vpack.c.bf16 %v467_v1, %v461_v63  ;;  %v460_v8 = vld [vmem:[#allocation12 + $0x2a0] sm:$0xff]  ;;  %v466_v9 = vld [vmem:[#allocation12 + $0x2d0] sm:$0xff] }
  0x96   :  { %1253 = vmatpush1.bf16.msra.mxu1 %v1252_v50  ;;  %v652_v10 = vld [vmem:[#allocation12 + $0x8a0] sm:$0xff]  ;;  %v1322_v11 = vpack.c.bf16 %v659_v3, %v653_v2  ;;  %v658_v12 = vld [vmem:[#allocation12 + $0x8d0] sm:$0xff]  ;;  %v473_v13 = vld [vmem:[#allocation12 + $0x308] sm:$0xff]  ;;  %v1260_v17 = vpack.c.bf16 %v466_v9, %v460_v8 }
  0x97   :  { %1317 = vmatpush1.bf16.msra.mxu0 %v1316_v54  ;;  %1255 = vmatprep.subr.bf16.mxu1 %v1254_v55  ;;  %v479_v14 = vld [vmem:[#allocation12 + $0x338] sm:$0xff]  ;;  %v381_v15 = vld [vmem:[#allocation12 + $0x28] sm:$0xff]  ;;  %v1324_v18 = vpack.c.bf16 %v658_v12, %v652_v10  ;;  %v472_v20 = vld [vmem:[#allocation12 + $0x300] sm:$0xff] }
  0x98   :  { %168 = vadd.xlane.f32.xlu1 %v167_v4  ;;  %1319 = vmatprep.subr.bf16.mxu0 %v1318_v60  ;;  %v387_v16 = vld [vmem:[#allocation12 + $0x58] sm:$0xff]  ;;  %v1262_v19 = vpack.c.bf16 %v479_v14, %v473_v13  ;;  %v478_v21 = vld [vmem:[#allocation12 + $0x330] sm:$0xff]  ;;  %v380_v22 = vld [vmem:[#allocation12 + $0x20] sm:$0xff] }
  0x99   :  { %v1422_v23 = vpack.c.bf16 %v387_v16, %v381_v15  ;;  %v386_v24 = vld [vmem:[#allocation12 + $0x50] sm:$0xff]  ;;  %v485_v25 = vld [vmem:[#allocation12 + $0x368] sm:$0xff]  ;;  %v491_v26 = vld [vmem:[#allocation12 + $0x398] sm:$0xff]  ;;  %v1264_v29 = vpack.c.bf16 %v478_v21, %v472_v20 }
  0x9a   :  { %1257 = vmatpush1.bf16.msra.mxu1 %v1256_v5  ;;  %v393_v27 = vld [vmem:[#allocation12 + $0x88] sm:$0xff]  ;;  %v399_v28 = vld [vmem:[#allocation12 + $0xb8] sm:$0xff]  ;;  %v1424_v31 = vpack.c.bf16 %v386_v24, %v380_v22  ;;  %v1266_v32 = vpack.c.bf16 %v491_v26, %v485_v25  ;;  %v484_v33 = vld [vmem:[#allocation12 + $0x360] sm:$0xff] }
  0x9b   :  { %1321 = vmatpush1.bf16.msra.mxu0 %v1320_v6  ;;  %1259 = vmatprep.subr.bf16.mxu1 %v1258_v7  ;;  %v1921_v30 = vld [vmem:[#allocation6 + $0x10] sm:$0xff]  ;;  %v392_v35 = vld [vmem:[#allocation12 + $0x80] sm:$0xff]  ;;  %v1426_v36 = vpack.c.bf16 %v399_v28, %v393_v27  ;;  %v503_v39 = vld [vmem:[#allocation12 + $0x3f8] sm:$0xff] }
  0x9c   :  { %1323 = vmatprep.subr.bf16.mxu0 %v1322_v11  ;;  %v490_v34 = vld [vmem:[#allocation12 + $0x390] sm:$0xff]  ;;  %v497_v37 = vld [vmem:[#allocation12 + $0x3c8] sm:$0xff]  ;;  %v411_v41 = vld [vmem:[#allocation12 + $0x118] sm:$0xff] }
  0x9d   :  { %v398_v38 = vld [vmem:[#allocation12 + $0xb0] sm:$0xff]  ;;  %v405_v40 = vld [vmem:[#allocation12 + $0xe8] sm:$0xff]  ;;  %v1268_v42 = vpack.c.bf16 %v490_v34, %v484_v33  ;;  %v1270_v44 = vpack.c.bf16 %v503_v39, %v497_v37  ;;  %v496_v45 = vld [vmem:[#allocation12 + $0x3c0] sm:$0xff] }
  0x9e   :  { %1261 = vmatpush1.bf16.msra.mxu1 %v1260_v17  ;;  %v1428_v43 = vpack.c.bf16 %v398_v38, %v392_v35  ;;  %v502_v46 = vld [vmem:[#allocation12 + $0x3f0] sm:$0xff]  ;;  %v404_v47 = vld [vmem:[#allocation12 + $0xe0] sm:$0xff]  ;;  %v1430_v48 = vpack.c.bf16 %v411_v41, %v405_v40  ;;  %v509_v50 = vld [vmem:[#allocation12 + $0x428] sm:$0xff] }
  0x9f   :  { %1325 = vmatpush1.bf16.msra.mxu0 %v1324_v18  ;;  %1263 = vmatprep.subr.bf16.mxu1 %v1262_v19  ;;  %v410_v49 = vld [vmem:[#allocation12 + $0x110] sm:$0xff]  ;;  %v515_v51 = vld [vmem:[#allocation12 + $0x458] sm:$0xff]  ;;  %v417_v52 = vld [vmem:[#allocation12 + $0x148] sm:$0xff]  ;;  %v1272_v54 = vpack.c.bf16 %v502_v46, %v496_v45 }
  0xa0   :  { %1423 = vmatprep.subr.bf16.mxu0 %v1422_v23  ;;  %v423_v53 = vld [vmem:[#allocation12 + $0x178] sm:$0xff]  ;;  %v1432_v55 = vpack.c.bf16 %v410_v49, %v404_v47  ;;  %v1274_v56 = vpack.c.bf16 %v515_v51, %v509_v50  ;;  %v508_v57 = vld [vmem:[#allocation12 + $0x420] sm:$0xff]  ;;  %v514_v58 = vld [vmem:[#allocation12 + $0x450] sm:$0xff] }
  0xa1   :  { %v416_v59 = vld [vmem:[#allocation12 + $0x140] sm:$0xff]  ;;  %v1434_v60 = vpack.c.bf16 %v423_v53, %v417_v52  ;;  %v422_v61 = vld [vmem:[#allocation12 + $0x170] sm:$0xff]  ;;  %v521_v62 = vld [vmem:[#allocation12 + $0x488] sm:$0xff]  ;;  %v1276_v3 = vpack.c.bf16 %v514_v58, %v508_v57 }
  0xa2   :  { %1265 = vmatpush1.bf16.msra.mxu1 %v1264_v29  ;;  %838 = vmatmul.mubr.f32.vlgmr.msra.gmra.mrb[0].mxu0 %v1921_v30  ;;  %v527_v63 = vld [vmem:[#allocation12 + $0x4b8] sm:$0xff]  ;;  %v429_v1 = vld [vmem:[#allocation12 + $0x1a8] sm:$0xff]  ;;  %v1436_v4 = vpack.c.bf16 %v422_v61, %v416_v59  ;;  %v520_v6 = vld [vmem:[#allocation12 + $0x480] sm:$0xff] }
  0xa3   :  { %1425 = vmatpush1.bf16.msra.mxu0 %v1424_v31  ;;  %1267 = vmatprep.subr.bf16.mxu1 %v1266_v32  ;;  %v435_v2 = vld [vmem:[#allocation12 + $0x1d8] sm:$0xff]  ;;  %v1278_v5 = vpack.c.bf16 %v527_v63, %v521_v62  ;;  %v526_v7 = vld [vmem:[#allocation12 + $0x4b0] sm:$0xff]  ;;  %v428_v8 = vld [vmem:[#allocation12 + $0x1a0] sm:$0xff] }
  0xa4   :  { %1427 = vmatprep.subr.bf16.mxu0 %v1426_v36  ;;  %843 = vmatprep.mubr.f32.mxu0 %v1776_v0  ;;  %v1438_v9 = vpack.c.bf16 %v435_v2, %v429_v1  ;;  %v434_v10 = vld [vmem:[#allocation12 + $0x1d0] sm:$0xff]  ;;  %v533_v11 = vld [vmem:[#allocation12 + $0x4e8] sm:$0xff]  ;;  %v539_v12 = vld [vmem:[#allocation12 + $0x518] sm:$0xff]  ;;  %v1280_v16 = vpack.c.bf16 %v526_v7, %v520_v6 }
  0xa5   :  { %v441_v13 = vld [vmem:[#allocation12 + $0x208] sm:$0xff]  ;;  %v447_v14 = vld [vmem:[#allocation12 + $0x238] sm:$0xff]  ;;  %v1440_v17 = vpack.c.bf16 %v434_v10, %v428_v8  ;;  %v1282_v18 = vpack.c.bf16 %v539_v12, %v533_v11  ;;  %v532_v19 = vld [vmem:[#allocation12 + $0x4e0] sm:$0xff] }
  0xa6   :  { %1269 = vmatpush1.bf16.msra.mxu1 %v1268_v42  ;;  %v1925_v15 = vld [vmem:[#allocation6 + $0x8] sm:$0xff]  ;;  %v538_v20 = vld [vmem:[#allocation12 + $0x510] sm:$0xff]  ;;  %v1442_v22 = vpack.c.bf16 %v447_v14, %v441_v13  ;;  %v551_v25 = vld [vmem:[#allocation12 + $0x578] sm:$0xff] }
  0xa7   :  { %1429 = vmatpush1.bf16.msra.mxu0 %v1428_v43  ;;  %1271 = vmatprep.subr.bf16.mxu1 %v1270_v44  ;;  %v440_v21 = vld [vmem:[#allocation12 + $0x200] sm:$0xff]  ;;  %v446_v23 = vld [vmem:[#allocation12 + $0x230] sm:$0xff]  ;;  %v545_v24 = vld [vmem:[#allocation12 + $0x548] sm:$0xff]  ;;  %v1284_v28 = vpack.c.bf16 %v538_v20, %v532_v19 }
  0xa8   :  { %1431 = vmatprep.subr.bf16.mxu0 %v1430_v48  ;;  %760 = vmatprep.mubr.f32.mxu1 %v1925_v15  ;;  %v453_v26 = vld [vmem:[#allocation12 + $0x268] sm:$0xff]  ;;  %v459_v27 = vld [vmem:[#allocation12 + $0x298] sm:$0xff]  ;;  %v1444_v29 = vpack.c.bf16 %v446_v23, %v440_v21  ;;  %v1286_v31 = vpack.c.bf16 %v551_v25, %v545_v24  ;;  %v544_v32 = vld [vmem:[#allocation12 + $0x540] sm:$0xff] }
  0xa9   :  { %v550_v33 = vld [vmem:[#allocation12 + $0x570] sm:$0xff]  ;;  %v452_v34 = vld [vmem:[#allocation12 + $0x260] sm:$0xff]  ;;  %v1446_v35 = vpack.c.bf16 %v459_v27, %v453_v26  ;;  %v557_v38 = vld [vmem:[#allocation12 + $0x5a8] sm:$0xff] }
  0xaa   :  { %1273 = vmatpush1.bf16.msra.mxu1 %v1272_v54  ;;  %v458_v36 = vld [vmem:[#allocation12 + $0x290] sm:$0xff]  ;;  %v563_v37 = vld [vmem:[#allocation12 + $0x5d8] sm:$0xff]  ;;  %v465_v39 = vld [vmem:[#allocation12 + $0x2c8] sm:$0xff]  ;;  %v1288_v41 = vpack.c.bf16 %v550_v33, %v544_v32 }
  0xab   :  { %1433 = vmatpush1.bf16.msra.mxu0 %v1432_v55  ;;  %1275 = vmatprep.subr.bf16.mxu1 %v1274_v56  ;;  %v471_v40 = vld [vmem:[#allocation12 + $0x2f8] sm:$0xff]  ;;  %v1448_v42 = vpack.c.bf16 %v458_v36, %v452_v34  ;;  %v1290_v43 = vpack.c.bf16 %v563_v37, %v557_v38  ;;  %v556_v44 = vld [vmem:[#allocation12 + $0x5a0] sm:$0xff]  ;;  %v562_v45 = vld [vmem:[#allocation12 + $0x5d0] sm:$0xff] }
  0xac   :  { %1435 = vmatprep.subr.bf16.mxu0 %v1434_v60  ;;  %v464_v46 = vld [vmem:[#allocation12 + $0x2c0] sm:$0xff]  ;;  %v1450_v47 = vpack.c.bf16 %v471_v40, %v465_v39  ;;  %v470_v48 = vld [vmem:[#allocation12 + $0x2f0] sm:$0xff]  ;;  %v379_v49 = vld [vmem:[#allocation12 + $0x18] sm:$0xff]  ;;  %v1292_v53 = vpack.c.bf16 %v562_v45, %v556_v44 }
  0xad   :  { %v385_v50 = vld [vmem:[#allocation12 + $0x48] sm:$0xff]  ;;  %v483_v52 = vld [vmem:[#allocation12 + $0x358] sm:$0xff]  ;;  %v1452_v54 = vpack.c.bf16 %v470_v48, %v464_v46  ;;  %v378_v56 = vld [vmem:[#allocation12 + $0x10] sm:$0xff] }
  0xae   :  { %1277 = vmatpush1.bf16.msra.mxu1 %v1276_v3  ;;  %v477_v51 = vld [vmem:[#allocation12 + $0x328] sm:$0xff]  ;;  %v1326_v55 = vpack.c.bf16 %v385_v50, %v379_v49  ;;  %v384_v57 = vld [vmem:[#allocation12 + $0x40] sm:$0xff]  ;;  %v482_v60 = vld [vmem:[#allocation12 + $0x350] sm:$0xff] }
  0xaf   :  { %1437 = vmatpush1.bf16.msra.mxu0 %v1436_v4  ;;  %1279 = vmatprep.subr.bf16.mxu1 %v1278_v5  ;;  %v476_v58 = vld [vmem:[#allocation12 + $0x320] sm:$0xff]  ;;  %v1454_v59 = vpack.c.bf16 %v483_v52, %v477_v51  ;;  %v391_v61 = vld [vmem:[#allocation12 + $0x78] sm:$0xff]  ;;  %v397_v62 = vld [vmem:[#allocation12 + $0xa8] sm:$0xff]  ;;  %v1328_v3 = vpack.c.bf16 %v384_v57, %v378_v56 }
  0xb0   :  { %1439 = vmatprep.subr.bf16.mxu0 %v1438_v9  ;;  %v489_v63 = vld [vmem:[#allocation12 + $0x388] sm:$0xff]  ;;  %v495_v1 = vld [vmem:[#allocation12 + $0x3b8] sm:$0xff]  ;;  %v1456_v4 = vpack.c.bf16 %v482_v60, %v476_v58  ;;  %v1330_v5 = vpack.c.bf16 %v397_v62, %v391_v61  ;;  %v390_v6 = vld [vmem:[#allocation12 + $0x70] sm:$0xff] }
  0xb1   :  { %v1928_v2 = vld [vmem:[#allocation6] sm:$0xff]  ;;  %v1458_v9 = vpack.c.bf16 %v495_v1, %v489_v63  ;;  %v494_v10 = vld [vmem:[#allocation12 + $0x3b0] sm:$0xff]  ;;  %v409_v12 = vld [vmem:[#allocation12 + $0x108] sm:$0xff] }
  0xb2   :  { %1281 = vmatpush1.bf16.msra.mxu1 %v1280_v16  ;;  %v396_v7 = vld [vmem:[#allocation12 + $0xa0] sm:$0xff]  ;;  %v403_v11 = vld [vmem:[#allocation12 + $0xd8] sm:$0xff]  ;;  %v501_v13 = vld [vmem:[#allocation12 + $0x3e8] sm:$0xff] }
  0xb3   :  { %1441 = vmatpush1.bf16.msra.mxu0 %v1440_v17  ;;  %1283 = vmatprep.subr.bf16.mxu1 %v1282_v18  ;;  %v488_v8 = vld [vmem:[#allocation12 + $0x380] sm:$0xff]  ;;  %v507_v14 = vld [vmem:[#allocation12 + $0x418] sm:$0xff]  ;;  %v1332_v17 = vpack.c.bf16 %v396_v7, %v390_v6  ;;  %v1334_v19 = vpack.c.bf16 %v409_v12, %v403_v11  ;;  %v402_v20 = vld [vmem:[#allocation12 + $0xd0] sm:$0xff] }
  0xb4   :  { %1443 = vmatprep.subr.bf16.mxu0 %v1442_v22  ;;  %v1931_v16 = vld [vmem:[#allocation6 + $0x28] sm:$0xff]  ;;  %v1460_v18 = vpack.c.bf16 %v494_v10, %v488_v8  ;;  %v1462_v23 = vpack.c.bf16 %v507_v14, %v501_v13  ;;  %v506_v24 = vld [vmem:[#allocation12 + $0x410] sm:$0xff]  ;;  %v415_v25 = vld [vmem:[#allocation12 + $0x138] sm:$0xff] }
  0xb5   :  { %844 = vmatmul.mubr.f32.gmra.mrb[2].mxu0 %v1931_v16  ;;  %v408_v21 = vld [vmem:[#allocation12 + $0x100] sm:$0xff]  ;;  %v421_v26 = vld [vmem:[#allocation12 + $0x168] sm:$0xff]  ;;  %v414_v33 = vld [vmem:[#allocation12 + $0x130] sm:$0xff] }
  0xb6   :  { %1285 = vmatpush1.bf16.msra.mxu1 %v1284_v28  ;;  %v500_v22 = vld [vmem:[#allocation12 + $0x3e0] sm:$0xff]  ;;  %1068 = vmatprep.mubr.f32.mxu0 %v1925_v15  ;;  %v513_v27 = vld [vmem:[#allocation12 + $0x448] sm:$0xff]  ;;  %v519_v28 = vld [vmem:[#allocation12 + $0x478] sm:$0xff]  ;;  %v1338_v32 = vpack.c.bf16 %v421_v26, %v415_v25 }
  0xb7   :  { %1445 = vmatpush1.bf16.msra.mxu0 %v1444_v29  ;;  %1287 = vmatprep.subr.bf16.mxu1 %v1286_v31  ;;  %v1336_v29 = vpack.c.bf16 %v408_v21, %v402_v20  ;;  %v1464_v31 = vpack.c.bf16 %v506_v24, %v500_v22  ;;  %v420_v34 = vld [vmem:[#allocation12 + $0x160] sm:$0xff]  ;;  %v1466_v36 = vpack.c.bf16 %v519_v28, %v513_v27  ;;  %v518_v38 = vld [vmem:[#allocation12 + $0x470] sm:$0xff]  ;;  %v427_v37 = vld [vmem:[#allocation12 + $0x198] sm:$0xff] }
  0xb8   :  { %1447 = vmatprep.subr.bf16.mxu0 %v1446_v35  ;;  %v512_v35 = vld [vmem:[#allocation12 + $0x440] sm:$0xff]  ;;  %v433_v39 = vld [vmem:[#allocation12 + $0x1c8] sm:$0xff]  ;;  %v426_v45 = vld [vmem:[#allocation12 + $0x190] sm:$0xff] }
  0xb9   :  { %v525_v40 = vld [vmem:[#allocation12 + $0x4a8] sm:$0xff]  ;;  %v1342_v44 = vpack.c.bf16 %v433_v39, %v427_v37  ;;  %v432_v46 = vld [vmem:[#allocation12 + $0x1c0] sm:$0xff]  ;;  %v530_v49 = vld [vmem:[#allocation12 + $0x4d0] sm:$0xff] }
  0xba   :  { %1289 = vmatpush1.bf16.msra.mxu1 %v1288_v41  ;;  %v531_v41 = vld [vmem:[#allocation12 + $0x4d8] sm:$0xff]  ;;  %v445_v51 = vld [vmem:[#allocation12 + $0x228] sm:$0xff]  ;;  %v438_v57 = vld [vmem:[#allocation12 + $0x1f0] sm:$0xff] }
  0xbb   :  { %1449 = vmatpush1.bf16.msra.mxu0 %v1448_v42  ;;  %1291 = vmatprep.subr.bf16.mxu1 %v1290_v43  ;;  %v1340_v42 = vpack.c.bf16 %v420_v34, %v414_v33  ;;  %v1468_v43 = vpack.c.bf16 %v518_v38, %v512_v35  ;;  %v1470_v48 = vpack.c.bf16 %v531_v41, %v525_v40  ;;  %v439_v50 = vld [vmem:[#allocation12 + $0x1f8] sm:$0xff]  ;;  %v537_v52 = vld [vmem:[#allocation12 + $0x508] sm:$0xff]  ;;  %v444_v58 = vld [vmem:[#allocation12 + $0x220] sm:$0xff] }
  0xbc   :  { %1451 = vmatprep.subr.bf16.mxu0 %v1450_v47  ;;  %v524_v47 = vld [vmem:[#allocation12 + $0x4a0] sm:$0xff]  ;;  %v1346_v56 = vpack.c.bf16 %v445_v51, %v439_v50  ;;  %v542_v61 = vld [vmem:[#allocation12 + $0x530] sm:$0xff]  ;;  %v451_v62 = vld [vmem:[#allocation12 + $0x258] sm:$0xff] }
  0xbd   :  { %v457_v63 = vld [vmem:[#allocation12 + $0x288] sm:$0xff]  ;;  %v456_v8 = vld [vmem:[#allocation12 + $0x280] sm:$0xff]  ;;  %v554_v10 = vld [vmem:[#allocation12 + $0x590] sm:$0xff] }
  0xbe   :  { %1293 = vmatpush1.bf16.msra.mxu1 %v1292_v53  ;;  %v543_v53 = vld [vmem:[#allocation12 + $0x538] sm:$0xff]  ;;  %v549_v1 = vld [vmem:[#allocation12 + $0x568] sm:$0xff]  ;;  %v1350_v7 = vpack.c.bf16 %v457_v63, %v451_v62  ;;  %v468_v24 = vld [vmem:[#allocation12 + $0x2e0] sm:$0xff] }
  0xbf   :  { %1453 = vmatpush1.bf16.msra.mxu0 %v1452_v54  ;;  %1327 = vmatprep.subr.bf16.mxu1 %v1326_v55  ;;  %v1344_v54 = vpack.c.bf16 %v432_v46, %v426_v45  ;;  %v1472_v55 = vpack.c.bf16 %v530_v49, %v524_v47  ;;  %v1474_v60 = vpack.c.bf16 %v543_v53, %v537_v52  ;;  %v463_v12 = vld [vmem:[#allocation12 + $0x2b8] sm:$0xff]  ;;  %v469_v13 = vld [vmem:[#allocation12 + $0x2e8] sm:$0xff]  ;;  %v560_v25 = vld [vmem:[#allocation12 + $0x5c0] sm:$0xff] }
  0xc0   :  { %1455 = vmatprep.subr.bf16.mxu0 %v1454_v59  ;;  %v536_v59 = vld [vmem:[#allocation12 + $0x500] sm:$0xff]  ;;  %v1938_v20 = vld [vmem:[#allocation6 + $0x18] sm:$0xff]  ;;  %v1354_v22 = vpack.c.bf16 %v469_v13, %v463_v12  ;;  %v505_v53 = vld [vmem:[#allocation12 + $0x408] sm:$0xff] }
  0xc1   :  { %761 = vmatmul.mubr.f32.vlgmr.msra.gmra.mrb[0].mxu1 %v1928_v2  ;;  %v1476_v6 = vpack.c.bf16 %v542_v61, %v536_v59  ;;  %v1935_v14 = vld [vmem:[#allocation6 + $0x20] sm:$0xff]  ;;  %v566_v27 = vld [vmem:[#allocation12 + $0x5f0] sm:$0xff] }
  0xc2   :  { %1329 = vmatpush1.bf16.msra.mxu1 %v1328_v3  ;;  %v555_v3 = vld [vmem:[#allocation12 + $0x598] sm:$0xff]  ;;  %766 = vmatprep.mubr.f32.mxu1 %v1935_v14  ;;  %v1484_v34 = vpack.c.bf16 %v566_v27, %v560_v25  ;;  %v480_v38 = vld [vmem:[#allocation12 + $0x340] sm:$0xff]  ;;  %v578_v40 = vld [vmem:[#allocation12 + $0x650] sm:$0xff] }
  0xc3   :  { %1457 = vmatpush1.bf16.msra.mxu0 %v1456_v4  ;;  %1331 = vmatprep.subr.bf16.mxu1 %v1330_v5  ;;  %v1348_v4 = vpack.c.bf16 %v444_v58, %v438_v57  ;;  %v450_v5 = vld [vmem:[#allocation12 + $0x250] sm:$0xff]  ;;  %v1478_v11 = vpack.c.bf16 %v555_v3, %v549_v1  ;;  %v475_v28 = vld [vmem:[#allocation12 + $0x318] sm:$0xff]  ;;  %v572_v37 = vld [vmem:[#allocation12 + $0x620] sm:$0xff] }
  0xc4   :  { %1459 = vmatprep.subr.bf16.mxu0 %v1458_v9  ;;  %v548_v9 = vld [vmem:[#allocation12 + $0x560] sm:$0xff]  ;;  %v487_v41 = vld [vmem:[#allocation12 + $0x378] sm:$0xff]  ;;  %v486_v47 = vld [vmem:[#allocation12 + $0x370] sm:$0xff] }
  0xc5   :  { %v1480_v21 = vpack.c.bf16 %v554_v10, %v548_v9  ;;  %767 = vmatmul.mubr.f32.gmra.mrb[2].mxu1 %v1938_v20  ;;  %v584_v49 = vld [vmem:[#allocation12 + $0x680] sm:$0xff]  ;;  %v590_v51 = vld [vmem:[#allocation12 + $0x6b0] sm:$0xff]  ;;  %v499_v52 = vld [vmem:[#allocation12 + $0x3d8] sm:$0xff] }
  0xc6   :  { %1333 = vmatpush1.bf16.msra.mxu1 %v1332_v17  ;;  %v561_v17 = vld [vmem:[#allocation12 + $0x5c8] sm:$0xff]  ;;  %914 = vmatprep.mubr.f32.mxu1 %v1925_v15  ;;  %v1488_v15 = vpack.c.bf16 %v578_v40, %v572_v37  ;;  %v1492_v57 = vpack.c.bf16 %v590_v51, %v584_v49  ;;  %v1366_v58 = vpack.c.bf16 %v505_v53, %v499_v52  ;;  %v498_v59 = vld [vmem:[#allocation12 + $0x3d0] sm:$0xff]  ;;  %v596_v61 = vld [vmem:[#allocation12 + $0x6e0] sm:$0xff] }
  0xc7   :  { %1461 = vmatpush1.bf16.msra.mxu0 %v1460_v18  ;;  %1335 = vmatprep.subr.bf16.mxu1 %v1334_v19  ;;  %v567_v18 = vld [vmem:[#allocation12 + $0x5f8] sm:$0xff]  ;;  %v1352_v19 = vpack.c.bf16 %v456_v8, %v450_v5  ;;  %v602_v63 = vld [vmem:[#allocation12 + $0x710] sm:$0xff]  ;;  %v517_v3 = vld [vmem:[#allocation12 + $0x468] sm:$0xff] }
  0xc8   :  { %1463 = vmatprep.subr.bf16.mxu0 %v1462_v23  ;;  %v462_v23 = vld [vmem:[#allocation12 + $0x2b0] sm:$0xff]  ;;  %v1482_v26 = vpack.c.bf16 %v567_v18, %v561_v17  ;;  %v511_v1 = vld [vmem:[#allocation12 + $0x438] sm:$0xff]  ;;  %v516_v10 = vld [vmem:[#allocation12 + $0x460] sm:$0xff] }
  0xc9   :  { %v1356_v33 = vpack.c.bf16 %v468_v24, %v462_v23  ;;  %v615_v5 = vld [vmem:[#allocation12 + $0x778] sm:$0xff]  ;;  %v1370_v8 = vpack.c.bf16 %v517_v3, %v511_v1  ;;  %v510_v9 = vld [vmem:[#allocation12 + $0x430] sm:$0xff]  ;;  %v529_v18 = vld [vmem:[#allocation12 + $0x4c8] sm:$0xff] }
  0xca   :  { %1337 = vmatpush1.bf16.msra.mxu1 %v1336_v29  ;;  %v481_v29 = vld [vmem:[#allocation12 + $0x348] sm:$0xff]  ;;  %v614_v13 = vld [vmem:[#allocation12 + $0x770] sm:$0xff]  ;;  %v523_v17 = vld [vmem:[#allocation12 + $0x498] sm:$0xff] }
  0xcb   :  { %1465 = vmatpush1.bf16.msra.mxu0 %v1464_v31  ;;  %1339 = vmatprep.subr.bf16.mxu1 %v1338_v32  ;;  %v573_v31 = vld [vmem:[#allocation12 + $0x628] sm:$0xff]  ;;  %v579_v32 = vld [vmem:[#allocation12 + $0x658] sm:$0xff]  ;;  %v1358_v35 = vpack.c.bf16 %v481_v29, %v475_v28  ;;  %v1374_v24 = vpack.c.bf16 %v529_v18, %v523_v17  ;;  %v522_v25 = vld [vmem:[#allocation12 + $0x490] sm:$0xff] }
  0xcc   :  { %1467 = vmatprep.subr.bf16.mxu0 %v1466_v36  ;;  %v474_v36 = vld [vmem:[#allocation12 + $0x310] sm:$0xff]  ;;  %v1486_v39 = vpack.c.bf16 %v579_v32, %v573_v31  ;;  %v620_v27 = vld [vmem:[#allocation12 + $0x7a0] sm:$0xff]  ;;  %v535_v31 = vld [vmem:[#allocation12 + $0x4f8] sm:$0xff] }
  0xcd   :  { %v1360_v45 = vpack.c.bf16 %v480_v38, %v474_v36  ;;  %v626_v29 = vld [vmem:[#allocation12 + $0x7d0] sm:$0xff]  ;;  %v541_v32 = vld [vmem:[#allocation12 + $0x528] sm:$0xff]  ;;  %v632_v40 = vld [vmem:[#allocation12 + $0x800] sm:$0xff] }
  0xce   :  { %1341 = vmatpush1.bf16.msra.mxu1 %v1340_v42  ;;  %v493_v42 = vld [vmem:[#allocation12 + $0x3a8] sm:$0xff]  ;;  %v1504_v36 = vpack.c.bf16 %v626_v29, %v620_v27  ;;  %v1378_v38 = vpack.c.bf16 %v541_v32, %v535_v31  ;;  %v534_v37 = vld [vmem:[#allocation12 + $0x4f0] sm:$0xff]  ;;  %v644_v51 = vld [vmem:[#allocation12 + $0x860] sm:$0xff] }
  0xcf   :  { %1469 = vmatpush1.bf16.msra.mxu0 %v1468_v43  ;;  %1343 = vmatprep.subr.bf16.mxu1 %v1342_v44  ;;  %v585_v43 = vld [vmem:[#allocation12 + $0x688] sm:$0xff]  ;;  %v591_v44 = vld [vmem:[#allocation12 + $0x6b8] sm:$0xff]  ;;  %v1362_v46 = vpack.c.bf16 %v493_v42, %v487_v41  ;;  %v638_v42 = vld [vmem:[#allocation12 + $0x830] sm:$0xff] }
  0xd0   :  { %1471 = vmatprep.subr.bf16.mxu0 %v1470_v48  ;;  %v492_v48 = vld [vmem:[#allocation12 + $0x3a0] sm:$0xff]  ;;  %v1490_v50 = vpack.c.bf16 %v591_v44, %v585_v43  ;;  %v547_v43 = vld [vmem:[#allocation12 + $0x558] sm:$0xff]  ;;  %v553_v44 = vld [vmem:[#allocation12 + $0x588] sm:$0xff] }
  0xd1   :  { %v546_v49 = vld [vmem:[#allocation12 + $0x550] sm:$0xff]  ;;  %v607_v27 = vld [vmem:[#allocation12 + $0x738] sm:$0xff]  ;;  %v612_v32 = vld [vmem:[#allocation12 + $0x760] sm:$0xff] }
  0xd2   :  { %1345 = vmatpush1.bf16.msra.mxu1 %v1344_v54  ;;  %v597_v54 = vld [vmem:[#allocation12 + $0x6e8] sm:$0xff]  ;;  %v650_v53 = vld [vmem:[#allocation12 + $0x890] sm:$0xff] }
  0xd3   :  { %1473 = vmatpush1.bf16.msra.mxu0 %v1472_v55  ;;  %1347 = vmatprep.subr.bf16.mxu1 %v1346_v56  ;;  %v603_v55 = vld [vmem:[#allocation12 + $0x718] sm:$0xff]  ;;  %v1364_v56 = vpack.c.bf16 %v492_v48, %v486_v47  ;;  %v1508_v47 = vpack.c.bf16 %v638_v42, %v632_v40  ;;  %v1382_v48 = vpack.c.bf16 %v553_v44, %v547_v43  ;;  %v662_v3 = vld [vmem:[#allocation12 + $0x8f0] sm:$0xff]  ;;  %v636_v42 = vld [vmem:[#allocation12 + $0x820] sm:$0xff] }
  0xd4   :  { %1475 = vmatprep.subr.bf16.mxu0 %v1474_v60  ;;  %v504_v60 = vld [vmem:[#allocation12 + $0x400] sm:$0xff]  ;;  %v1494_v62 = vpack.c.bf16 %v603_v55, %v597_v54  ;;  %v559_v54 = vld [vmem:[#allocation12 + $0x5b8] sm:$0xff]  ;;  %v565_v55 = vld [vmem:[#allocation12 + $0x5e8] sm:$0xff] }
  0xd5   :  { %v582_v18 = vld [vmem:[#allocation12 + $0x670] sm:$0xff]  ;;  %v643_v43 = vld [vmem:[#allocation12 + $0x858] sm:$0xff]  ;;  %v649_v44 = vld [vmem:[#allocation12 + $0x888] sm:$0xff] }
  0xd6   :  { %1349 = vmatpush1.bf16.msra.mxu1 %v1348_v4  ;;  %v609_v4 = vld [vmem:[#allocation12 + $0x748] sm:$0xff]  ;;  %v606_v31 = vld [vmem:[#allocation12 + $0x730] sm:$0xff] }
  0xd7   :  { %1477 = vmatpush1.bf16.msra.mxu0 %v1476_v6  ;;  %1351 = vmatprep.subr.bf16.mxu1 %v1350_v7  ;;  %v1368_v6 = vpack.c.bf16 %v504_v60, %v498_v59  ;;  %v1496_v7 = vpack.c.bf16 %v602_v63, %v596_v61  ;;  %v1498_v12 = vpack.c.bf16 %v615_v5, %v609_v4  ;;  %v558_v61 = vld [vmem:[#allocation12 + $0x5b0] sm:$0xff]  ;;  %v656_v63 = vld [vmem:[#allocation12 + $0x8c0] sm:$0xff]  ;;  %v571_v4 = vld [vmem:[#allocation12 + $0x618] sm:$0xff] }
  0xd8   :  { %1479 = vmatprep.subr.bf16.mxu0 %v1478_v11  ;;  %v608_v11 = vld [vmem:[#allocation12 + $0x740] sm:$0xff]  ;;  %v1512_v59 = vpack.c.bf16 %v650_v53, %v644_v51  ;;  %v1386_v60 = vpack.c.bf16 %v565_v55, %v559_v54  ;;  %v577_v5 = vld [vmem:[#allocation12 + $0x648] sm:$0xff] }
  0xd9   :  { %v1500_v23 = vpack.c.bf16 %v614_v13, %v608_v11  ;;  %v583_v11 = vld [vmem:[#allocation12 + $0x678] sm:$0xff]  ;;  %v660_v53 = vld [vmem:[#allocation12 + $0x8e0] sm:$0xff] }
  0xda   :  { %1353 = vmatpush1.bf16.msra.mxu1 %v1352_v19  ;;  %v621_v19 = vld [vmem:[#allocation12 + $0x7a8] sm:$0xff] }
  0xdb   :  { %1481 = vmatpush1.bf16.msra.mxu0 %v1480_v21  ;;  %1355 = vmatprep.subr.bf16.mxu1 %v1354_v22  ;;  %v627_v21 = vld [vmem:[#allocation12 + $0x7d8] sm:$0xff]  ;;  %v1372_v22 = vpack.c.bf16 %v516_v10, %v510_v9  ;;  %v570_v9 = vld [vmem:[#allocation12 + $0x610] sm:$0xff]  ;;  %v576_v10 = vld [vmem:[#allocation12 + $0x640] sm:$0xff] }
  0xdc   :  { %1483 = vmatprep.subr.bf16.mxu0 %v1482_v26  ;;  %v528_v26 = vld [vmem:[#allocation12 + $0x4c0] sm:$0xff]  ;;  %v1502_v28 = vpack.c.bf16 %v627_v21, %v621_v19  ;;  %v1392_v13 = vpack.c.bf16 %v576_v10, %v570_v9  ;;  %v595_v21 = vld [vmem:[#allocation12 + $0x6d8] sm:$0xff]  ;;  %v208_v10 = vld [vmem:[#allocation8] sm:$0x3f] }
  0xdd   :  { %v588_v19 = vld [vmem:[#allocation12 + $0x6a0] sm:$0xff] }
  0xde   :  { %1357 = vmatpush1.bf16.msra.mxu1 %v1356_v33  ;;  %v633_v33 = vld [vmem:[#allocation12 + $0x808] sm:$0xff] }
  0xdf   :  { %1485 = vmatpush1.bf16.msra.mxu0 %v1484_v34  ;;  %1359 = vmatprep.subr.bf16.mxu1 %v1358_v35  ;;  %v639_v34 = vld [vmem:[#allocation12 + $0x838] sm:$0xff]  ;;  %v1376_v35 = vpack.c.bf16 %v528_v26, %v522_v25  ;;  %v594_v25 = vld [vmem:[#allocation12 + $0x6d0] sm:$0xff]  ;;  %v600_v26 = vld [vmem:[#allocation12 + $0x700] sm:$0xff] }
  0xe0   :  { %1487 = vmatprep.subr.bf16.mxu0 %v1486_v39  ;;  %v540_v39 = vld [vmem:[#allocation12 + $0x520] sm:$0xff]  ;;  %v1506_v41 = vpack.c.bf16 %v639_v34, %v633_v33  ;;  %v1400_v29 = vpack.c.bf16 %v600_v26, %v594_v25  ;;  %v619_v33 = vld [vmem:[#allocation12 + $0x798] sm:$0xff]  ;;  %v625_v34 = vld [vmem:[#allocation12 + $0x7c8] sm:$0xff] }
  0xe2   :  { %1361 = vmatpush1.bf16.msra.mxu1 %v1360_v45  ;;  %1069 = vmatmul.mubr.f32.vlgmr.msra.gmra.mrb[4].mxu0 %v1928_v2  ;;  %v645_v45 = vld [vmem:[#allocation12 + $0x868] sm:$0xff] }
  0xe3   :  { %1489 = vmatpush1.bf16.msra.mxu0 %v1488_v15  ;;  %1363 = vmatprep.subr.bf16.mxu1 %v1362_v46  ;;  %v651_v15 = vld [vmem:[#allocation12 + $0x898] sm:$0xff]  ;;  %v1380_v46 = vpack.c.bf16 %v540_v39, %v534_v37 }
  0xe4   :  { %1491 = vmatprep.subr.bf16.mxu0 %v1490_v50  ;;  %1074 = vmatprep.mubr.f32.mxu0 %v1935_v14  ;;  %v552_v50 = vld [vmem:[#allocation12 + $0x580] sm:$0xff]  ;;  %v1510_v52 = vpack.c.bf16 %v651_v15, %v645_v45  ;;  %v631_v37 = vld [vmem:[#allocation12 + $0x7f8] sm:$0xff]  ;;  %v1414_v15 = vpack.c.bf16 %v649_v44, %v643_v43 }
  0xe6   :  { %1365 = vmatpush1.bf16.msra.mxu1 %v1364_v56  ;;  %1075 = vmatmul.mubr.f32.gmra.mrb[6].mxu0 %v1938_v20  ;;  %v657_v56 = vld [vmem:[#allocation12 + $0x8c8] sm:$0xff] }
  0xe7   :  { %1493 = vmatpush1.bf16.msra.mxu0 %v1492_v57  ;;  %1367 = vmatprep.subr.bf16.mxu1 %v1366_v58  ;;  %v663_v57 = vld [vmem:[#allocation12 + $0x8f8] sm:$0xff]  ;;  %v1384_v58 = vpack.c.bf16 %v552_v50, %v546_v49  ;;  %v661_v49 = vld [vmem:[#allocation12 + $0x8e8] sm:$0xff] }
  0xe8   :  { %1495 = vmatprep.subr.bf16.mxu0 %v1494_v62  ;;  %1145 = vmatprep.mubr.f32.mxu0 %v1776_v0  ;;  %v564_v62 = vld [vmem:[#allocation12 + $0x5e0] sm:$0xff]  ;;  %v1514_v1 = vpack.c.bf16 %v663_v57, %v657_v56 }
  0xea   :  { %1369 = vmatpush1.bf16.msra.mxu1 %v1368_v6  ;;  %v1388_v6 = vpack.c.bf16 %v564_v62, %v558_v61  ;;  %v210_v61 = vlaneseq }
  0xeb   :  { %1497 = vmatpush1.bf16.msra.mxu0 %v1496_v7  ;;  %1371 = vmatprep.subr.bf16.mxu1 %v1370_v8  ;;  %v1516_v7 = vpack.c.bf16 %v662_v3, %v656_v63  ;;  %v1390_v8 = vpack.c.bf16 %v577_v5, %v571_v4 }
  0xec   :  { %1499 = vmatprep.subr.bf16.mxu0 %v1498_v12  ;;  %v589_v12 = vld [vmem:[#allocation12 + $0x6a8] sm:$0xff]  ;;  %v211_v5 = vshrl.u32 %v210_v61, 7 }
  0xed   :  { %v1394_v17 = vpack.c.bf16 %v589_v12, %v583_v11 }
  0xee   :  { %1373 = vmatpush1.bf16.msra.mxu1 %v1372_v22  ;;  %v601_v22 = vld [vmem:[#allocation12 + $0x708] sm:$0xff]  ;;  %v1964_v9 = vsub.s32 0, %v211_v5  ;;  %v1966_v11 = vsub.s32 1, %v211_v5  ;;  %v1968_v12 = vsub.s32 2, %v211_v5 }
  0xef   :  { %1501 = vmatpush1.bf16.msra.mxu0 %v1500_v23  ;;  %1375 = vmatprep.subr.bf16.mxu1 %v1374_v24  ;;  %v1396_v23 = vpack.c.bf16 %v588_v19, %v582_v18  ;;  %v1398_v24 = vpack.c.bf16 %v601_v22, %v595_v21  ;;  %v252_v18 = vld [vmem:[#allocation9] sm:$0x3f] }
  0xf0   :  { %1503 = vmatprep.subr.bf16.mxu0 %v1502_v28  ;;  %v613_v28 = vld [vmem:[#allocation12 + $0x768] sm:$0xff]  ;;  %v1977_v19 = vrot.slane %v208_v10, %v1964_v9  ;;  %v1980_v21 = vrot.slane %v208_v10, %v1966_v11  ;;  %v1983_v22 = vrot.slane %v208_v10, %v1968_v12  ;;  %v1995_v26 = vrot.slane %v252_v18, %v1964_v9 }
  0xf2   :  { %1377 = vmatpush1.bf16.msra.mxu1 %v1376_v35  ;;  %v1404_v35 = vpack.c.bf16 %v612_v32, %v606_v31 }
  0xf3   :  { %1505 = vmatpush1.bf16.msra.mxu0 %v1504_v36  ;;  %1379 = vmatprep.subr.bf16.mxu1 %v1378_v38  ;;  %v1406_v36 = vpack.c.bf16 %v625_v34, %v619_v33  ;;  %v618_v38 = vld [vmem:[#allocation12 + $0x790] sm:$0xff]  ;;  %v1567_v33 = vld [vmem:[#allocation3] sm:$0xff] }
  0xf4   :  { %1507 = vmatprep.subr.bf16.mxu0 %v1506_v41  ;;  %v630_v41 = vld [vmem:[#allocation12 + $0x7f0] sm:$0xff] }
  0xf5   :  { %v1412_v45 = vpack.c.bf16 %v636_v42, %v630_v41  ;;  %v1572_v42 = vld [vmem:[#allocation3 + $0x28] sm:$0xff] }
  0xf6   :  { %1381 = vmatpush1.bf16.msra.mxu1 %v1380_v46  ;;  %v642_v46 = vld [vmem:[#allocation12 + $0x850] sm:$0xff] }
  0xf7   :  { %1509 = vmatpush1.bf16.msra.mxu0 %v1508_v47  ;;  %1383 = vmatprep.subr.bf16.mxu1 %v1382_v48  ;;  %v648_v47 = vld [vmem:[#allocation12 + $0x880] sm:$0xff]  ;;  %v655_v48 = vld [vmem:[#allocation12 + $0x8b8] sm:$0xff] }
  0xf8   :  { %1511 = vmatprep.subr.bf16.mxu0 %v1510_v52  ;;  %v1416_v50 = vpack.c.bf16 %v648_v47, %v642_v46  ;;  %v1418_v51 = vpack.c.bf16 %v661_v49, %v655_v48  ;;  %v654_v52 = vld [vmem:[#allocation12 + $0x8b0] sm:$0xff] }
  0xf9   :  { %v1420_v54 = vpack.c.bf16 %v660_v53, %v654_v52 }
  0xfa   :  { %1385 = vmatpush1.bf16.msra.mxu1 %v1384_v58 }
  0xfb   :  { %1513 = vmatpush1.bf16.msra.mxu0 %v1512_v59  ;;  %1387 = vmatprep.subr.bf16.mxu1 %v1386_v60 }
  0xfc   :  { %1515 = vmatprep.subr.bf16.mxu0 %v1514_v1 }
  0xfe   :  { %1389 = vmatpush1.bf16.msra.mxu1 %v1388_v6 }
  0xff   :  { %1517 = vmatpush1.bf16.msra.mxu0 %v1516_v7  ;;  %1391 = vmatprep.subr.bf16.mxu1 %v1390_v8 }
 0x101   :  { %915 = vmatmul.mubr.f32.vlgmr.msra.gmra.mrb[4].mxu1 %v1928_v2  ;;  %v1402_v2 = vpack.c.bf16 %v613_v28, %v607_v27  ;;  %v1998_v27 = vrot.slane %v252_v18, %v1966_v11  ;;  %v296_v28 = vld [vmem:[#allocation11] sm:$0x3f] }
 0x102   :  { %1146 = vmatmul.mubr.f32.vlgmr.msra.gmra.mrb[4].mxu0 %v1921_v30  ;;  %1393 = vmatpush1.bf16.msra.mxu1 %v1392_v13  ;;  %v1972_v13 = vsub.s32 4, %v211_v5  ;;  %v301_v44 = vrot.slane %v296_v28, %v1964_v9 }
 0x103   :  { %1395 = vmatprep.subr.bf16.mxu1 %v1394_v17  ;;  %1151 = vmatprep.mubr.f32.mxu0 %v1776_v0  ;;  %v1974_v17 = vsub.s32 5, %v211_v5 }
 0x104   :  { %920 = vmatprep.mubr.f32.mxu1 %v1935_v14  ;;  %v624_v14 = vld [vmem:[#allocation12 + $0x7c0] sm:$0xff]  ;;  %v2007_v31 = vrot.slane %v252_v18, %v1972_v13 }
 0x105   :  { %921 = vmatmul.mubr.f32.gmra.mrb[6].mxu1 %v1938_v20  ;;  %v637_v20 = vld [vmem:[#allocation12 + $0x828] sm:$0xff]  ;;  %v1408_v39 = vpack.c.bf16 %v624_v14, %v618_v38  ;;  %v1992_v25 = vrot.slane %v208_v10, %v1974_v17  ;;  %v2010_v32 = vrot.slane %v252_v18, %v1974_v17 }
 0x106   :  { %1397 = vmatpush1.bf16.msra.mxu1 %v1396_v23  ;;  %1152 = vmatmul.mubr.f32.gmra.mrb[6].mxu0 %v1931_v16  ;;  %v1410_v40 = vpack.c.bf16 %v637_v20, %v631_v37  ;;  %v1569_v38 = vld [vmem:[#allocation3 + $0x10] sm:$0xff]  ;;  %v1570_v37 = vld [vmem:[#allocation3 + $0x18] sm:$0xff] }
 0x107   :  { %1399 = vmatprep.subr.bf16.mxu1 %v1398_v24  ;;  %991 = vmatprep.mubr.f32.mxu1 %v1776_v0  ;;  %v1989_v24 = vrot.slane %v208_v10, %v1972_v13 }
 0x10a   :  { %1401 = vmatpush1.bf16.msra.mxu1 %v1400_v29  ;;  %v2001_v29 = vrot.slane %v252_v18, %v1968_v12 }
 0x10b   :  { %1403 = vmatprep.subr.bf16.mxu1 %v1402_v2 }
 0x10e   :  { %1405 = vmatpush1.bf16.msra.mxu1 %v1404_v35  ;;  %v1568_v35 = vld [vmem:[#allocation3 + $0x8] sm:$0xff] }
 0x10f   :  { %1407 = vmatprep.subr.bf16.mxu1 %v1406_v36 }
 0x112   :  { %1409 = vmatpush1.bf16.msra.mxu1 %v1408_v39 }
 0x113   :  { %1411 = vmatprep.subr.bf16.mxu1 %v1410_v40  ;;  %v1571_v40 = vld [vmem:[#allocation3 + $0x20] sm:$0xff] }
 0x116   :  { %1413 = vmatpush1.bf16.msra.mxu1 %v1412_v45  ;;  %v305_v45 = vrot.slane %v296_v28, %v1966_v11 }
 0x117   :  { %1415 = vmatprep.subr.bf16.mxu1 %v1414_v15 }
 0x11a   :  { %1417 = vmatpush1.bf16.msra.mxu1 %v1416_v50 }
 0x11b   :  { %1419 = vmatprep.subr.bf16.mxu1 %v1418_v51  ;;  %v309_v51 = vrot.slane %v296_v28, %v1968_v12 }
 0x11d   :  { %v136_v55 = vpop.xlane.xlu0 %135 }
 0x11e   :  { %v1953_v56 = vmul.f32 0.0013020834, %v136_v55  ;;  %1421 = vmatpush1.bf16.msra.mxu1 %v1420_v54 }
 0x11f   :  { %v162_v57 = vpop.xlane.xlu1 %161 }
 0x120   :  { %v172_v58 = vmul.f32 0.0013020834, %v162_v57  ;;  %v174_v59 = vmul.f32 %v1953_v56, %v1953_v56  ;;  %v180_v34 = vsub.f32 %v1567_v33, %v1953_v56  ;;  %v181_v36 = vsub.f32 %v1568_v35, %v1953_v56 }
 0x121   :  { %v143_v60 = vpop.xlane.xlu0 %142  ;;  %992 = vmatmul.mubr.f32.vlgmr.msra.gmra.mrb[4].mxu1 %v1921_v30  ;;  %v182_v14 = vsub.f32 %v1569_v38, %v1953_v56  ;;  %v183_v20 = vsub.f32 %v1570_v37, %v1953_v56  ;;  %v184_v41 = vsub.f32 %v1571_v40, %v1953_v56  ;;  %v185_v43 = vsub.f32 %v1572_v42, %v1953_v56 }
 0x122   :  { %v176_v62 = vsub.f32 %v172_v58, %v174_v59  ;;  %v1958_v63 = vmul.f32 0.0013020834, %v143_v60  ;;  %997 = vmatprep.mubr.f32.mxu1 %v1776_v0  ;;  %v1970_v0 = vsub.s32 3, %v211_v5  ;;  %v317_v58 = vrot.slane %v296_v28, %v1972_v13  ;;  %v1573_v60 = vld [vmem:[#allocation3 + $0x30] sm:$0xff] }
 0x123   :  { %v321_v59 = vrot.slane %v296_v28, %v1974_v17 }
 0x124   :  { %v178_v1 = vmax.f32 %v176_v62, 0.0  ;;  %v175_v3 = vmul.f32 %v1958_v63, %v1958_v63  ;;  %v1986_v23 = vrot.slane %v208_v10, %v1970_v0  ;;  %v2004_v2 = vrot.slane %v252_v18, %v1970_v0  ;;  %v1576_v10 = vld [vmem:[#allocation3 + $0x48] sm:$0xff]  ;;  %v1577_v18 = vld [vmem:[#allocation3 + $0x50] sm:$0xff] }
 0x125   :  { %v169_v4 = vpop.xlane.xlu1 %168  ;;  %998 = vmatmul.mubr.f32.gmra.mrb[6].mxu1 %v1931_v16  ;;  %v313_v52 = vrot.slane %v296_v28, %v1970_v0  ;;  %v186_v61 = vsub.f32 %v1573_v60, %v1958_v63  ;;  %v190_v28 = vsub.f32 %v1577_v18, %v1958_v63 }
 0x126   :  { %v192_v6 = vadd.f32 1e-12, %v178_v1  ;;  %v173_v7 = vmul.f32 0.0013020834, %v169_v4  ;;  %v1574_v4 = vld [vmem:[#allocation3 + $0x38] sm:$0xff] }
 0x127   :  { %v187_v5 = vsub.f32 %v1574_v4, %v1958_v63 }
 0x128   :  { %1555 = vrsqrt.f32 %v192_v6  ;;  %v177_v8 = vsub.f32 %v173_v7, %v175_v3 }
 0x12a   :  { %v179_v30 = vmax.f32 %v177_v8, 0.0  ;;  %v1575_v8 = vld [vmem:[#allocation3 + $0x40] sm:$0xff] }
 0x12c   :  { %v193_v16 = vadd.f32 1e-12, %v179_v30  ;;  %v188_v30 = vsub.f32 %v1575_v8, %v1958_v63 }
 0x12e   :  { %1557 = vrsqrt.f32 %v193_v16  ;;  %v189_v16 = vsub.f32 %v1576_v10, %v1958_v63 }
 0x132   :  { %v1556_v39 = vpop.eup %1555 }
 0x133   :  { %v196_v15 = vmul.f32 %v1556_v39, %v180_v34  ;;  %v197_v46 = vmul.f32 %v1556_v39, %v181_v36  ;;  %v198_v47 = vmul.f32 %v1556_v39, %v182_v14  ;;  %v199_v48 = vmul.f32 %v1556_v39, %v183_v20  ;;  %v1578_v36 = vld [vmem:[#allocation3 + $0x58] sm:$0xff] }
 0x134   :  { %v200_v49 = vmul.f32 %v1556_v39, %v184_v41  ;;  %v201_v50 = vmul.f32 %v1556_v39, %v185_v43  ;;  %v191_v38 = vsub.f32 %v1578_v36, %v1958_v63 }
 0x135   :  { %v240_v53 = vmul.f32 %v1977_v19, %v196_v15  ;;  %v241_v54 = vmul.f32 %v1980_v21, %v197_v46  ;;  %v242_v55 = vmul.f32 %v1983_v22, %v198_v47  ;;  %v243_v56 = vmul.f32 %v1986_v23, %v199_v48 }
 0x136   :  { %v244_v57 = vmul.f32 %v1989_v24, %v200_v49  ;;  %v245_v7 = vmul.f32 %v1992_v25, %v201_v50 }
 0x137   :  { %v2031_v62 = vadd.f32 %v1995_v26, %v240_v53  ;;  %v2034_v1 = vadd.f32 %v1998_v27, %v241_v54  ;;  %v2037_v3 = vadd.f32 %v2001_v29, %v242_v55  ;;  %v2045_v33 = vadd.f32 %v2004_v2, %v243_v56 }
 0x138   :  { %v1558_v6 = vpop.eup %1557  ;;  %v2051_v14 = vadd.f32 %v2007_v31, %v244_v57  ;;  %v2055_v15 = vadd.f32 %v2010_v32, %v245_v7 }
 0x139   :  { %v328_v34 = vmul.f32 %v301_v44, %v2031_v62  ;;  %v329_v35 = vmul.f32 %v305_v45, %v2034_v1  ;;  %v330_v37 = vmul.f32 %v309_v51, %v2037_v3  ;;  %v202_v20 = vmul.f32 %v1558_v6, %v186_v61 }
 0x13a   :  { %v203_v39 = vmul.f32 %v1558_v6, %v187_v5  ;;  %v204_v41 = vmul.f32 %v1558_v6, %v188_v30  ;;  %v205_v42 = vmul.f32 %v1558_v6, %v189_v16  ;;  %v206_v43 = vmul.f32 %v1558_v6, %v190_v28 }
 0x13b   :  { %v340_v40 = vadd.f32 %v329_v35, %v328_v34  ;;  %v207_v46 = vmul.f32 %v1558_v6, %v191_v38  ;;  %v246_v47 = vmul.f32 %v1977_v19, %v202_v20  ;;  %v331_v63 = vmul.f32 %v313_v52, %v2045_v33 }
 0x13c   :  { %v247_v48 = vmul.f32 %v1980_v21, %v203_v39  ;;  %v248_v50 = vmul.f32 %v1983_v22, %v204_v41  ;;  %v249_v53 = vmul.f32 %v1986_v23, %v205_v42  ;;  %v250_v54 = vmul.f32 %v1989_v24, %v206_v43 }
 0x13d   :  { %v341_v49 = vadd.f32 %v340_v40, %v330_v37  ;;  %v2064_v55 = vadd.f32 %v1995_v26, %v246_v47  ;;  %v332_v57 = vmul.f32 %v317_v58, %v2051_v14  ;;  %v251_v60 = vmul.f32 %v1992_v25, %v207_v46 }
 0x13e   :  { %v2067_v56 = vadd.f32 %v1998_v27, %v247_v48  ;;  %v2071_v21 = vadd.f32 %v2001_v29, %v248_v50  ;;  %v2075_v22 = vadd.f32 %v2004_v2, %v249_v53  ;;  %v333_v26 = vmul.f32 %v321_v59, %v2055_v15 }
 0x13f   :  { %v342_v19 = vadd.f32 %v341_v49, %v331_v63  ;;  %v334_v23 = vmul.f32 %v301_v44, %v2064_v55  ;;  %v2081_v27 = vadd.f32 %v2007_v31, %v250_v54  ;;  %v2085_v6 = vadd.f32 %v2010_v32, %v251_v60 }
 0x140   :  { %v335_v24 = vmul.f32 %v305_v45, %v2067_v56  ;;  %v336_v4 = vmul.f32 %v309_v51, %v2071_v21  ;;  %v337_v25 = vmul.f32 %v313_v52, %v2075_v22  ;;  %v664_v51 = vld [vmem:[#allocation14] sm:$0x3f] }
 0x141   :  { %v343_v61 = vadd.f32 %v342_v19, %v332_v57  ;;  %v338_v44 = vmul.f32 %v317_v58, %v2081_v27  ;;  %v339_v7 = vmul.f32 %v321_v59, %v2085_v6  ;;  %v669_v16 = vrot.slane %v664_v51, %v1964_v9 }
 0x142   :  { %v347_v5 = vadd.f32 %v335_v24, %v334_v23  ;;  %v673_v32 = vrot.slane %v664_v51, %v1966_v11  ;;  %v355_v9 = vstv %s2131_s5  ;;  %v685_v23 = vrot.slane %v664_v51, %v1972_v13  ;;  %s1777_s5 = smov [#allocation15]  }
 0x143   :  { %v344_v29 = vadd.f32 %v343_v61, %v333_v26  ;;  %v689_v24 = vrot.slane %v664_v51, %v1974_v17  ;;  %s1213_s0 = sshll.u32 %s1777_s5, 4  ;;  %s1214_s0 = int_to_ptr.vmem [resolvable:$true] %s1213_s0 }
 0x144   :  { %v348_v2 = vadd.f32 %v347_v5, %v336_v4  ;;  %s1733_s11 = scalar_lea.vmem %s1214_s0, 1536  ;;  %p1738_p1 = scmp.lt.s32.totalorder %s1214_s0, %s1214_s0 }
 0x145   :  { %345 = vadd.xlane.f32.xlu0 %v344_v29  ;;  %v677_v29 = vrot.slane %v664_v51, %v1968_v12  ;;  %p1734_p0 = scmp.ne.s32.totalorder %s1214_s0, %s1733_s11  ;;  %p1739_p2 = scmp.lt.s32.totalorder %s1733_s11, %s1733_s11 }
 0x146   :  { %v349_v45 = vadd.f32 %v348_v2, %v337_v25 }
 0x147   :  { %p1740_p3 = por %p1739_p2, %p1738_p1 }
 0x148   :  { %v350_v8 = vadd.f32 %v349_v45, %v338_v44 }
 0x149   :  { %p1741_p4 = pnand %p1740_p3, %p1734_p0 }
 0x14a   :  { %v351_v30 = vadd.f32 %v350_v8, %v339_v7 }
 0x14c   :  { %352 = vadd.xlane.f32.xlu1 %v351_v30 }
 0x175   :  { %v839_v31 = vpop.f32.mrb[0].mxu0 }
 0x176   :  { %v841_v10 = vpop.f32.mrb[1].mxu0 }
 0x188   :  { %v845_v34 = vpop.f32.mrb[2].mxu0 }
 0x189   :  { %v847_v36 = vpop.f32.mrb[3].mxu0 }
 0x194   :  { %v762_v18 = vpop.f32.mrb[0].mxu1 }
 0x195   :  { %v763_v28 = vadd.f32 %v762_v18, %v669_v16  ;;  %v764_v52 = vpop.f32.mrb[1].mxu1 }
 0x196   :  { %v765_v35 = vadd.f32 %v764_v52, %v673_v32 }
 0x197   :  { %v840_v58 = vadd.f32 %v839_v31, %v763_v28 }
 0x198   :  { %v842_v38 = vadd.f32 %v841_v10, %v765_v35  ;;  %v768_v37 = vpop.f32.mrb[2].mxu1  ;;  %v681_v10 = vrot.slane %v664_v51, %v1970_v0 }
 0x199   :  { %v769_v59 = vadd.f32 %v768_v37, %v669_v16  ;;  %v770_v20 = vpop.f32.mrb[3].mxu1 }
 0x19a   :  { %v771_v39 = vadd.f32 %v770_v20, %v673_v32 }
 0x19b   :  { %v846_v40 = vadd.f32 %v845_v34, %v769_v59 }
 0x19c   :  { %v848_v41 = vadd.f32 %v847_v36, %v771_v39 }
 0x1d2   :  { %v346_v42 = vpop.xlane.xlu0 %345 }
 0x1d3   :  { %v356_v11 = vadd.f32 %v355_v9, %v346_v42 }
 0x1d5   :  { %v1228_v43 = vmul.f32 -1.442695, %v356_v11  ;;  %v1147_v46 = vpop.f32.mrb[4].mxu0 }
 0x1d6   :  { %v1149_v47 = vpop.f32.mrb[5].mxu0  ;;  %v1530_v61 = vadd.f32 %v1147_v46, %v685_v23 }
 0x1d7   :  { %1559 = vpow2.f32 %v1228_v43  ;;  %v1531_v4 = vadd.f32 %v1149_v47, %v689_v24 }
 0x1d9   :  { %v353_v48 = vpop.xlane.xlu1 %352  ;;  %v1153_v63 = vpop.f32.mrb[6].mxu0 }
 0x1da   :  { %v357_v49 = vadd.f32 %v355_v9, %v353_v48  ;;  %v1155_v50 = vpop.f32.mrb[7].mxu0  ;;  %v1532_v17 = vadd.f32 %v1153_v63, %v685_v23 }
 0x1db   :  { %v1533_v31 = vadd.f32 %v1155_v50, %v689_v24 }
 0x1dc   :  { %v1229_v53 = vmul.f32 -1.442695, %v357_v49 }
 0x1de   :  { %1561 = vpow2.f32 %v1229_v53 }
 0x1e1   :  { %v1560_v54 = vpop.eup %1559 }
 0x1e2   :  { %v364_v57 = vadd.f32 1.0, %v1560_v54 }
 0x1e4   :  { %1563 = vrcp.f32 %v364_v57 }
 0x1e8   :  { %v1562_v19 = vpop.eup %1561 }
 0x1e9   :  { %v365_v60 = vadd.f32 1.0, %v1562_v19 }
 0x1eb   :  { %1565 = vrcp.f32 %v365_v60 }
 0x1ee   :  { %v1564_v26 = vpop.eup %1563 }
 0x1ef   :  { %v1158_v5 = vsub.f32 1.0, %v1564_v26  ;;  %v1172_v25 = vmul.f32 %v1564_v26, %v840_v58  ;;  %v1173_v2 = vmul.f32 %v1564_v26, %v842_v38  ;;  %v1176_v44 = vmul.f32 %v1564_v26, %v1530_v61 }
 0x1f0   :  { %v1177_v45 = vmul.f32 %v1564_v26, %v1531_v4 }
 0x1f1   :  { %v1160_v7 = vmul.f32 %v1158_v5, %v2031_v62  ;;  %v1161_v8 = vmul.f32 %v1158_v5, %v2034_v1  ;;  %v1164_v30 = vmul.f32 %v1158_v5, %v2051_v14  ;;  %v1165_v13 = vmul.f32 %v1158_v5, %v2055_v15 }
 0x1f2   :  { %v1162_v15 = vmul.f32 %v1158_v5, %v2037_v3  ;;  %v1163_v42 = vmul.f32 %v1158_v5, %v2045_v33 }
 0x1f3   :  { %v1184_v16 = vadd.f32 %v1172_v25, %v1160_v7  ;;  %v1185_v32 = vadd.f32 %v1173_v2, %v1161_v8  ;;  %v1188_v18 = vadd.f32 %v1176_v44, %v1164_v30  ;;  %v1189_v12 = vadd.f32 %v1177_v45, %v1165_v13 }
 0x1f4   :  { %v993_v28 = vpop.f32.mrb[4].mxu1 }
 0x1f5   :  { %v1566_v52 = vpop.eup %1565  ;;  %1196 = vst [vmem:[#allocation15] sm:$0xff] %v1184_v16  ;;  %1197 = vst [vmem:[#allocation15 + $0x8] sm:$0xff] %v1185_v32  ;;  %v1526_v62 = vadd.f32 %v993_v28, %v677_v29  ;;  %v995_v1 = vpop.f32.mrb[5].mxu1 }
 0x1f6   :  { %1200 = vst [vmem:[#allocation15 + $0x20] sm:$0xff] %v1188_v18  ;;  %1201 = vst [vmem:[#allocation15 + $0x28] sm:$0xff] %v1189_v12  ;;  %v1159_v34 = vsub.f32 1.0, %v1566_v52  ;;  %v1178_v14 = vmul.f32 %v1566_v52, %v846_v40  ;;  %v1179_v35 = vmul.f32 %v1566_v52, %v848_v41  ;;  %v1182_v36 = vmul.f32 %v1566_v52, %v1532_v17 }
 0x1f7   :  { %v1183_v58 = vmul.f32 %v1566_v52, %v1533_v31  ;;  %v1174_v0 = vmul.f32 %v1564_v26, %v1526_v62  ;;  %v1527_v51 = vadd.f32 %v995_v1, %v681_v10 }
 0x1f8   :  { %v1166_v38 = vmul.f32 %v1159_v34, %v2064_v55  ;;  %v1167_v37 = vmul.f32 %v1159_v34, %v2067_v56  ;;  %v1170_v59 = vmul.f32 %v1159_v34, %v2081_v27  ;;  %v1171_v20 = vmul.f32 %v1159_v34, %v2085_v6  ;;  %v999_v39 = vpop.f32.mrb[6].mxu1 }
 0x1f9   :  { %v1186_v9 = vadd.f32 %v1174_v0, %v1162_v15  ;;  %v1175_v40 = vmul.f32 %v1564_v26, %v1527_v51  ;;  %v1528_v41 = vadd.f32 %v999_v39, %v677_v29  ;;  %v1001_v11 = vpop.f32.mrb[7].mxu1  ;;  %v1168_v55 = vmul.f32 %v1159_v34, %v2071_v21 }
 0x1fa   :  { %v1190_v3 = vadd.f32 %v1178_v14, %v1166_v38  ;;  %v1191_v43 = vadd.f32 %v1179_v35, %v1167_v37  ;;  %v1194_v46 = vadd.f32 %v1182_v36, %v1170_v59  ;;  %v1195_v47 = vadd.f32 %v1183_v58, %v1171_v20 }
 0x1fb   :  { %1198 = vst [vmem:[#allocation15 + $0x10] sm:$0xff] %v1186_v9  ;;  %v1187_v48 = vadd.f32 %v1175_v40, %v1163_v42  ;;  %v1180_v56 = vmul.f32 %v1566_v52, %v1528_v41  ;;  %v1529_v63 = vadd.f32 %v1001_v11, %v681_v10  ;;  %v1169_v27 = vmul.f32 %v1159_v34, %v2075_v22 }
 0x1fc   :  { %1202 = vst [vmem:[#allocation15 + $0x30] sm:$0xff] %v1190_v3  ;;  %1203 = vst [vmem:[#allocation15 + $0x38] sm:$0xff] %v1191_v43 }
 0x1fd   :  { %1206 = vst [vmem:[#allocation15 + $0x50] sm:$0xff] %v1194_v46  ;;  %1207 = vst [vmem:[#allocation15 + $0x58] sm:$0xff] %v1195_v47  ;;  %v1192_v33 = vadd.f32 %v1180_v56, %v1168_v55  ;;  %v1181_v6 = vmul.f32 %v1566_v52, %v1529_v63 }
 0x1fe   :  { %1199 = vst [vmem:[#allocation15 + $0x18] sm:$0xff] %v1187_v48 }
 0x1ff   :  { %1204 = vst [vmem:[#allocation15 + $0x40] sm:$0xff] %v1192_v33  ;;  %v1193_v49 = vadd.f32 %v1181_v6, %v1169_v27 }
 0x201   :  { %1205 = vst [vmem:[#allocation15 + $0x48] sm:$0xff] %v1193_v49 }
 0x202   :  { %1744 = shalt.err (!%p1741_p4)
}
 0x203   :  { %s1745_s24 = scalar_lea.hbm %s2134_s8, 1536 }
 0x204   :  { %p1746_p5 = scmp.ne.s32.totalorder %s2134_s8, %s1745_s24  ;;  %p1749_p6 = scmp.lt.u32.totalorder %s1745_s24, %s2134_s8 }
 0x206   :  { %p1751_p7 = pnand %p1749_p6, %p1746_p5 }
 0x208   :  { %1754 = shalt.err (!%p1751_p7)
}
 0x209   :  { %1219 = dma.vmem_to_hbm [thread:$0]  %s1214_s0, 1536, %s2134_s8, [#allocation5], %s1771_s19, %s1771_s19, %s1772_s20  }
 0x20a   :  { %1763 = dma.done.wait [#allocation5], 1536  }
 0x20b   :  { %1764 = vsyncadd [#allocation5], 4294965760 }
 0x20c   :  { %1223 = vsyncpa [#allocation4], 1 }
 0x20d   :  { %1224 = vsyncpa [#allocation7], 1 }
 0x20e   :  { %1225 = vsyncpa [#allocation10], 1 }
 0x20f   :  { %1226 = vsyncpa [#allocation13], 1 }
 0x210   :  { %1227 = vsyncpa [#allocation5], 1 }

</bundles_post_ra>
